<compile_context>
chip_gen: v5e
topology: v5e:2x2
jax: 0.10.0
libtpu: 0.0.40
codegen_flags: <defaults>
</compile_context>

<pallas_src>
import functools

import jax
import jax.numpy as jnp
from jax.experimental import pallas as pl
from jax.experimental.pallas import tpu as pltpu


def _conv_stats_kernel(x_ref, w_ref, conv_ref, stats_ref, acc_ref, *,
                       H, W, Cin, Cout_sub, mxu_dtype):
    """Pass 1: 3x3 conv for one image (9 accumulated tap matmuls) + BN stats.

    x_ref:     (1, H+2, W+2, Cin)   padded NHWC activation tile (f32)
    w_ref:     (9, Cin, Cout_pad)   per-tap weight matrices (f32, lane-padded Cout)
    conv_ref:  (1, Cout_sub, H*W)   channel-major conv output tile (bf16/f32)
    stats_ref: (1, 2, Cout_pad)     this image's [sum; sumsq] slot (f32)
    acc_ref:   (H*W, Cout_pad)      f32 VMEM accumulator scratch
    """
    acc_ref[...] = jnp.zeros_like(acc_ref)
    x = x_ref[0]                                           # (H+2, W+2, Cin) f32

    # 3x3 conv as 9 tap matmuls accumulated in f32 (no 9x im2col buffer).
    for dy in range(3):
        for dx in range(3):
            patch = x[dy:dy + H, dx:dx + W, :].reshape(H * W, Cin)
            w_tap = w_ref[dy * 3 + dx]                     # (Cin, Cout_pad)
            acc_ref[...] += jnp.dot(patch.astype(mxu_dtype),
                                    w_tap.astype(mxu_dtype),
                                    preferred_element_type=jnp.float32)

    acc = acc_ref[...]                                     # (H*W, Cout_pad) f32

    # Per-image BN statistics (exact f32). Reduced over images on the XLA side,
    # so this grid axis stays fully "parallel" (both v7x TensorCores usable).
    s = jnp.sum(acc, axis=0, keepdims=True)                # (1, Cout_pad)
    sq = jnp.sum(acc * acc, axis=0, keepdims=True)         # (1, Cout_pad)
    stats_ref[0] = jnp.concatenate([s, sq], axis=0)        # (2, Cout_pad)

    # Channel-major, narrow-channel intermediate: lane dim = H*W (unmasked stores),
    # only Cout_sub channels written (no 128-lane zero padding to HBM).
    conv_ref[0] = acc.T[:Cout_sub, :].astype(conv_ref.dtype)


def _bn_relu_kernel(conv_ref, scale_ref, shift_ref, o_ref):
    """Pass 2: folded BN epilogue — one f32 FMA per element + ReLU, NCHW output."""
    v = conv_ref[0].astype(jnp.float32)                    # (Cout_sub, tile_hw)
    o_ref[0] = jnp.maximum(v * scale_ref[...] + shift_ref[...], 0.0)


def _round_up(v, m):
    return ((v + m - 1) // m) * m


def _pick_hw_tile(hw, c_sub, target_bytes=8 << 20):
    """Largest lane-dense (multiple-of-128) tile dividing hw within a byte budget."""
    if hw % 128 != 0:
        return hw                       # full extent (block == array dim is legal)
    per_col = c_sub * (2 + 4) * 2       # bf16 in + f32 out, double-buffered
    best = 128
    for t in range(128, hw + 1, 128):
        if hw % t == 0 and t * per_col <= target_bytes:
            best = t
    return best


def conv_batch_norm(x_nchw, weight, bias, gamma, beta, eps=1e-5,
                    conv_dtype=jnp.bfloat16):
    """Forward of ConvBatchNorm (training-mode BN). x_nchw: (N, Cin, H, W) float32.

    weight: (Cout, Cin, 3, 3), bias/gamma/beta: (Cout,). Returns (N, Cout, H, W) f32.
    conv_dtype: dtype of the conv intermediate (bf16 default; f32 for exact path).
    """
    N, Cin, H, W = x_nchw.shape
    Cout = weight.shape[0]
    HW = H * W
    Cout_pad = _round_up(Cout, 128)     # lane-dense MXU output / stats lanes
    Cout_sub = _round_up(Cout, 16)      # sublane-packed channel dim (bf16-safe)
    rows = N * HW

    # Conv bias cancels exactly under training-mode BatchNorm -> not used at all.
    del bias

    mxu_dtype = (jnp.bfloat16 if jnp.dtype(conv_dtype) == jnp.dtype(jnp.bfloat16)
                 else jnp.float32)

    # ---- glue: NCHW -> NHWC + spatial halo pad (single activation DMA per image) ----
    x = jnp.transpose(x_nchw, (0, 2, 3, 1)).astype(jnp.float32)        # (N,H,W,Cin)
    xp = jnp.pad(x, ((0, 0), (1, 1), (1, 1), (0, 0)))                  # (N,H+2,W+2,Cin)

    # weight (Cout,Cin,3,3) -> (3,3,Cin,Cout) -> (9,Cin,Cout_pad); kept f32 in HBM,
    # cast to the MXU dtype in-kernel.
    wmat = jnp.transpose(weight, (2, 3, 1, 0)).reshape(9, Cin, Cout).astype(jnp.float32)
    wmat = jnp.pad(wmat, ((0, 0), (0, 0), (0, Cout_pad - Cout)))

    flops = 2 * N * HW * 9 * Cin * Cout_pad
    bytes_accessed = (xp.size * 4 + wmat.size * 4
                      + N * Cout_sub * HW * jnp.dtype(conv_dtype).itemsize
                      + N * 2 * Cout_pad * 4)

    # ---- pass 1: conv + per-image sum/sumsq (grid fully parallel) ----
    conv3d, stats = pl.pallas_call(
        functools.partial(_conv_stats_kernel, H=H, W=W, Cin=Cin,
                          Cout_sub=Cout_sub, mxu_dtype=mxu_dtype),
        out_shape=(jax.ShapeDtypeStruct((N, Cout_sub, HW), conv_dtype),
                   jax.ShapeDtypeStruct((N, 2, Cout_pad), jnp.float32)),
        grid=(N,),
        in_specs=[
            pl.BlockSpec((1, H + 2, W + 2, Cin), lambda n: (n, 0, 0, 0)),
            pl.BlockSpec((9, Cin, Cout_pad), lambda n: (0, 0, 0)),
        ],
        out_specs=(
            pl.BlockSpec((1, Cout_sub, HW), lambda n: (n, 0, 0)),
            pl.BlockSpec((1, 2, Cout_pad), lambda n: (n, 0, 0)),
        ),
        scratch_shapes=[pltpu.VMEM((HW, Cout_pad), jnp.float32)],
        compiler_params=pltpu.CompilerParams(
            dimension_semantics=("parallel",),
            vmem_limit_bytes=48 * 1024 * 1024),
        cost_estimate=pl.CostEstimate(flops=flops, transcendentals=0,
                                      bytes_accessed=bytes_accessed),
    )(xp, wmat)

    # ---- tiny O(Cout) BN parameter math (XLA side) ----
    st = jnp.sum(stats, axis=0)                            # (2, Cout_pad)
    cnt = jnp.float32(rows)
    mean = st[0, :Cout] / cnt
    var = jnp.maximum(st[1, :Cout] / cnt - mean * mean, 0.0)   # biased batch variance
    inv_std = jax.lax.rsqrt(var + eps)
    scale_c = gamma.astype(jnp.float32) * inv_std
    shift_c = beta.astype(jnp.float32) - mean * scale_c
    scale = jnp.pad(scale_c, (0, Cout_sub - Cout)).reshape(Cout_sub, 1)
    shift = jnp.pad(shift_c, (0, Cout_sub - Cout)).reshape(Cout_sub, 1)

    # ---- pass 2: BN + ReLU, writes the NCHW layout directly ----
    tile_hw = _pick_hw_tile(HW, Cout_sub)
    y = pl.pallas_call(
        _bn_relu_kernel,
        out_shape=jax.ShapeDtypeStruct((N, Cout_sub, HW), jnp.float32),
        grid=(N, HW // tile_hw),
        in_specs=[
            pl.BlockSpec((1, Cout_sub, tile_hw), lambda n, t: (n, 0, t)),
            pl.BlockSpec((Cout_sub, 1), lambda n, t: (0, 0)),
            pl.BlockSpec((Cout_sub, 1), lambda n, t: (0, 0)),
        ],
        out_specs=pl.BlockSpec((1, Cout_sub, tile_hw), lambda n, t: (n, 0, t)),
        compiler_params=pltpu.CompilerParams(
            dimension_semantics=("parallel", "parallel"),
            vmem_limit_bytes=48 * 1024 * 1024),
    )(conv3d, scale, shift)

    if Cout_sub != Cout:
        y = y[:, :Cout, :]
    return y.reshape(N, Cout, H, W)                        # already channel-major


def _reference(x_nchw, weight, bias, gamma, beta, eps=1e-5):
    """Pure-JAX reference matching PyTorch ConvBatchNorm.forward (training BN)."""
    out = jax.lax.conv_general_dilated(
        x_nchw, weight, window_strides=(1, 1), padding=((1, 1), (1, 1)),
        dimension_numbers=("NCHW", "OIHW", "NCHW"))
    out = out + bias.reshape(1, -1, 1, 1)
    mean = jnp.mean(out, axis=(0, 2, 3), keepdims=True)
    var = jnp.mean((out - mean) ** 2, axis=(0, 2, 3), keepdims=True)   # biased
    out = (out - mean) * jax.lax.rsqrt(var + eps)
    out = out * gamma.reshape(1, -1, 1, 1) + beta.reshape(1, -1, 1, 1)
    return jnp.maximum(out, 0.0)


if __name__ == "__main__":
    N, Cin, Cout, H, W = 2, 4, 8, 16, 16

    key = jax.random.PRNGKey(0)
    kx, kw, kb, kg, kbe = jax.random.split(key, 5)
    x = jax.random.normal(kx, (N, Cin, H, W), dtype=jnp.float32)
    weight = jax.random.normal(kw, (Cout, Cin, 3, 3), dtype=jnp.float32) * 0.1
    bias = jax.random.normal(kb, (Cout,), dtype=jnp.float32) * 0.1
    gamma = 1.0 + 0.1 * jax.random.normal(kg, (Cout,), dtype=jnp.float32)
    beta = 0.1 * jax.random.normal(kbe, (Cout,), dtype=jnp.float32)

    ref = jax.block_until_ready(_reference(x, weight, bias, gamma, beta))

    # Exact f32-intermediate path: tight tolerance.
    out_f32 = jax.block_until_ready(
        conv_batch_norm(x, weight, bias, gamma, beta, conv_dtype=jnp.float32))
    assert out_f32.shape == (N, Cout, H, W)
    assert jnp.allclose(out_f32, ref, atol=1e-3, rtol=1e-3), "f32 path mismatch vs reference"

    # Default bf16-intermediate / bf16-MXU path (halves the dominant HBM stream);
    # tolerance widened for the intentional bf16 rounding of the conv intermediate.
    out_bf16 = jax.block_until_ready(conv_batch_norm(x, weight, bias, gamma, beta))
    assert out_bf16.shape == (N, Cout, H, W)
    assert jnp.allclose(out_bf16, ref, atol=2e-2, rtol=2e-2), "bf16 path mismatch vs reference"

    print("KERNEL_OK")
</pallas_src>

<mosaic_0001>
module attributes {stable_mosaic.version = 11 : i64} {
  func.func @_conv_stats_kernel(%arg0: i32, %arg1: memref<1x18x18x4xf32, #tpu.memory_space<vmem>>, %arg2: memref<9x4x128xf32, #tpu.memory_space<vmem>>, %arg3: memref<1x16x256xf32, #tpu.memory_space<vmem>>, %arg4: memref<1x2x128xf32, #tpu.memory_space<vmem>>, %arg5: memref<256x128xf32, #tpu.memory_space<vmem>>) attributes {dimension_semantics = [#tpu.dimension_semantics<parallel>], iteration_bounds = array<i64: 2>, scalar_prefetch = 0 : i64, scratch_operands = 1 : i64, tpu.core_type = #tpu.core_type<tc>, window_params = [{transform_indices = @transform_0, window_bounds = array<i64: 1, 18, 18, 4>}, {pipeline_mode = #tpu.pipeline_mode<synchronous>, transform_indices = @transform_1, window_bounds = array<i64: 9, 4, 128>}, {transform_indices = @transform_2, window_bounds = array<i64: 1, 16, 256>}, {transform_indices = @transform_3, window_bounds = array<i64: 1, 2, 128>}]} {
    %cst = arith.constant 0.000000e+00 : f32
    %0 = vector.broadcast %cst : f32 to vector<256x128xf32>
    %c0 = arith.constant 0 : index
    %c0_0 = arith.constant 0 : index
    %1 = vector.load %arg5[%c0, %c0_0] : memref<256x128xf32, #tpu.memory_space<vmem>>, vector<256x128xf32>
    tpu.vector_store %arg5[%c0, %c0_0], %0 {strides = array<i32>} : memref<256x128xf32, #tpu.memory_space<vmem>>, vector<256x128xf32>,
    %c0_1 = arith.constant 0 : index
    %c0_2 = arith.constant 0 : index
    %c0_3 = arith.constant 0 : index
    %c0_4 = arith.constant 0 : index
    %2 = vector.load %arg1[%c0_1, %c0_2, %c0_3, %c0_4] : memref<1x18x18x4xf32, #tpu.memory_space<vmem>>, vector<1x18x18x4xf32>
    %3 = vector.shape_cast %2 : vector<1x18x18x4xf32> to vector<18x18x4xf32>
    %4 = vector.extract_strided_slice %3 {offsets = [0, 0, 0], sizes = [16, 16, 4], strides = [1, 1, 1]} : vector<18x18x4xf32> to vector<16x16x4xf32>
    %5 = vector.shape_cast %4 : vector<16x16x4xf32> to vector<256x4xf32>
    %c0_5 = arith.constant 0 : index
    %c0_6 = arith.constant 0 : index
    %c0_7 = arith.constant 0 : index
    %6 = vector.load %arg2[%c0_5, %c0_6, %c0_7] : memref<9x4x128xf32, #tpu.memory_space<vmem>>, vector<1x4x128xf32>
    %7 = vector.shape_cast %6 : vector<1x4x128xf32> to vector<4x128xf32>
    %c0_8 = arith.constant 0 : index
    %c0_9 = arith.constant 0 : index
    %8 = vector.load %arg5[%c0_8, %c0_9] : memref<256x128xf32, #tpu.memory_space<vmem>>, vector<256x128xf32>
    %cst_10 = arith.constant dense<0.000000e+00> : vector<256x128xf32>
    %9 = tpu.matmul %5, %7, %cst_10 {dimension_numbers = #tpu.dot_dimension_numbers<[1], [0], [0], [1], [0, 0, 1, 1], [], []>} : vector<256x4xf32>, vector<4x128xf32>, vector<256x128xf32> -> vector<256x128xf32>
    %10 = arith.addf %8, %9 : vector<256x128xf32>
    %c0_11 = arith.constant 0 : index
    %c0_12 = arith.constant 0 : index
    %11 = vector.load %arg5[%c0_11, %c0_12] : memref<256x128xf32, #tpu.memory_space<vmem>>, vector<256x128xf32>
    tpu.vector_store %arg5[%c0_11, %c0_12], %10 {strides = array<i32>} : memref<256x128xf32, #tpu.memory_space<vmem>>, vector<256x128xf32>,
    %12 = vector.extract_strided_slice %3 {offsets = [0, 1, 0], sizes = [16, 16, 4], strides = [1, 1, 1]} : vector<18x18x4xf32> to vector<16x16x4xf32>
    %13 = vector.shape_cast %12 : vector<16x16x4xf32> to vector<256x4xf32>
    %c1 = arith.constant 1 : index
    %c0_13 = arith.constant 0 : index
    %c0_14 = arith.constant 0 : index
    %14 = vector.load %arg2[%c1, %c0_13, %c0_14] : memref<9x4x128xf32, #tpu.memory_space<vmem>>, vector<1x4x128xf32>
    %15 = vector.shape_cast %14 : vector<1x4x128xf32> to vector<4x128xf32>
    %c0_15 = arith.constant 0 : index
    %c0_16 = arith.constant 0 : index
    %16 = vector.load %arg5[%c0_15, %c0_16] : memref<256x128xf32, #tpu.memory_space<vmem>>, vector<256x128xf32>
    %cst_17 = arith.constant dense<0.000000e+00> : vector<256x128xf32>
    %17 = tpu.matmul %13, %15, %cst_17 {dimension_numbers = #tpu.dot_dimension_numbers<[1], [0], [0], [1], [0, 0, 1, 1], [], []>} : vector<256x4xf32>, vector<4x128xf32>, vector<256x128xf32> -> vector<256x128xf32>
    %18 = arith.addf %16, %17 : vector<256x128xf32>
    %c0_18 = arith.constant 0 : index
    %c0_19 = arith.constant 0 : index
    %19 = vector.load %arg5[%c0_18, %c0_19] : memref<256x128xf32, #tpu.memory_space<vmem>>, vector<256x128xf32>
    tpu.vector_store %arg5[%c0_18, %c0_19], %18 {strides = array<i32>} : memref<256x128xf32, #tpu.memory_space<vmem>>, vector<256x128xf32>,
    %20 = vector.extract_strided_slice %3 {offsets = [0, 2, 0], sizes = [16, 16, 4], strides = [1, 1, 1]} : vector<18x18x4xf32> to vector<16x16x4xf32>
    %21 = vector.shape_cast %20 : vector<16x16x4xf32> to vector<256x4xf32>
    %c2 = arith.constant 2 : index
    %c0_20 = arith.constant 0 : index
    %c0_21 = arith.constant 0 : index
    %22 = vector.load %arg2[%c2, %c0_20, %c0_21] : memref<9x4x128xf32, #tpu.memory_space<vmem>>, vector<1x4x128xf32>
    %23 = vector.shape_cast %22 : vector<1x4x128xf32> to vector<4x128xf32>
    %c0_22 = arith.constant 0 : index
    %c0_23 = arith.constant 0 : index
    %24 = vector.load %arg5[%c0_22, %c0_23] : memref<256x128xf32, #tpu.memory_space<vmem>>, vector<256x128xf32>
    %cst_24 = arith.constant dense<0.000000e+00> : vector<256x128xf32>
    %25 = tpu.matmul %21, %23, %cst_24 {dimension_numbers = #tpu.dot_dimension_numbers<[1], [0], [0], [1], [0, 0, 1, 1], [], []>} : vector<256x4xf32>, vector<4x128xf32>, vector<256x128xf32> -> vector<256x128xf32>
    %26 = arith.addf %24, %25 : vector<256x128xf32>
    %c0_25 = arith.constant 0 : index
    %c0_26 = arith.constant 0 : index
    %27 = vector.load %arg5[%c0_25, %c0_26] : memref<256x128xf32, #tpu.memory_space<vmem>>, vector<256x128xf32>
    tpu.vector_store %arg5[%c0_25, %c0_26], %26 {strides = array<i32>} : memref<256x128xf32, #tpu.memory_space<vmem>>, vector<256x128xf32>,
    %28 = vector.extract_strided_slice %3 {offsets = [1, 0, 0], sizes = [16, 16, 4], strides = [1, 1, 1]} : vector<18x18x4xf32> to vector<16x16x4xf32>
    %29 = vector.shape_cast %28 : vector<16x16x4xf32> to vector<256x4xf32>
    %c3 = arith.constant 3 : index
    %c0_27 = arith.constant 0 : index
    %c0_28 = arith.constant 0 : index
    %30 = vector.load %arg2[%c3, %c0_27, %c0_28] : memref<9x4x128xf32, #tpu.memory_space<vmem>>, vector<1x4x128xf32>
    %31 = vector.shape_cast %30 : vector<1x4x128xf32> to vector<4x128xf32>
    %c0_29 = arith.constant 0 : index
    %c0_30 = arith.constant 0 : index
    %32 = vector.load %arg5[%c0_29, %c0_30] : memref<256x128xf32, #tpu.memory_space<vmem>>, vector<256x128xf32>
    %cst_31 = arith.constant dense<0.000000e+00> : vector<256x128xf32>
    %33 = tpu.matmul %29, %31, %cst_31 {dimension_numbers = #tpu.dot_dimension_numbers<[1], [0], [0], [1], [0, 0, 1, 1], [], []>} : vector<256x4xf32>, vector<4x128xf32>, vector<256x128xf32> -> vector<256x128xf32>
    %34 = arith.addf %32, %33 : vector<256x128xf32>
    %c0_32 = arith.constant 0 : index
    %c0_33 = arith.constant 0 : index
    %35 = vector.load %arg5[%c0_32, %c0_33] : memref<256x128xf32, #tpu.memory_space<vmem>>, vector<256x128xf32>
    tpu.vector_store %arg5[%c0_32, %c0_33], %34 {strides = array<i32>} : memref<256x128xf32, #tpu.memory_space<vmem>>, vector<256x128xf32>,
    %36 = vector.extract_strided_slice %3 {offsets = [1, 1, 0], sizes = [16, 16, 4], strides = [1, 1, 1]} : vector<18x18x4xf32> to vector<16x16x4xf32>
    %37 = vector.shape_cast %36 : vector<16x16x4xf32> to vector<256x4xf32>
    %c4 = arith.constant 4 : index
    %c0_34 = arith.constant 0 : index
    %c0_35 = arith.constant 0 : index
    %38 = vector.load %arg2[%c4, %c0_34, %c0_35] : memref<9x4x128xf32, #tpu.memory_space<vmem>>, vector<1x4x128xf32>
    %39 = vector.shape_cast %38 : vector<1x4x128xf32> to vector<4x128xf32>
    %c0_36 = arith.constant 0 : index
    %c0_37 = arith.constant 0 : index
    %40 = vector.load %arg5[%c0_36, %c0_37] : memref<256x128xf32, #tpu.memory_space<vmem>>, vector<256x128xf32>
    %cst_38 = arith.constant dense<0.000000e+00> : vector<256x128xf32>
    %41 = tpu.matmul %37, %39, %cst_38 {dimension_numbers = #tpu.dot_dimension_numbers<[1], [0], [0], [1], [0, 0, 1, 1], [], []>} : vector<256x4xf32>, vector<4x128xf32>, vector<256x128xf32> -> vector<256x128xf32>
    %42 = arith.addf %40, %41 : vector<256x128xf32>
    %c0_39 = arith.constant 0 : index
    %c0_40 = arith.constant 0 : index
    %43 = vector.load %arg5[%c0_39, %c0_40] : memref<256x128xf32, #tpu.memory_space<vmem>>, vector<256x128xf32>
    tpu.vector_store %arg5[%c0_39, %c0_40], %42 {strides = array<i32>} : memref<256x128xf32, #tpu.memory_space<vmem>>, vector<256x128xf32>,
    %44 = vector.extract_strided_slice %3 {offsets = [1, 2, 0], sizes = [16, 16, 4], strides = [1, 1, 1]} : vector<18x18x4xf32> to vector<16x16x4xf32>
    %45 = vector.shape_cast %44 : vector<16x16x4xf32> to vector<256x4xf32>
    %c5 = arith.constant 5 : index
    %c0_41 = arith.constant 0 : index
    %c0_42 = arith.constant 0 : index
    %46 = vector.load %arg2[%c5, %c0_41, %c0_42] : memref<9x4x128xf32, #tpu.memory_space<vmem>>, vector<1x4x128xf32>
    %47 = vector.shape_cast %46 : vector<1x4x128xf32> to vector<4x128xf32>
    %c0_43 = arith.constant 0 : index
    %c0_44 = arith.constant 0 : index
    %48 = vector.load %arg5[%c0_43, %c0_44] : memref<256x128xf32, #tpu.memory_space<vmem>>, vector<256x128xf32>
    %cst_45 = arith.constant dense<0.000000e+00> : vector<256x128xf32>
    %49 = tpu.matmul %45, %47, %cst_45 {dimension_numbers = #tpu.dot_dimension_numbers<[1], [0], [0], [1], [0, 0, 1, 1], [], []>} : vector<256x4xf32>, vector<4x128xf32>, vector<256x128xf32> -> vector<256x128xf32>
    %50 = arith.addf %48, %49 : vector<256x128xf32>
    %c0_46 = arith.constant 0 : index
    %c0_47 = arith.constant 0 : index
    %51 = vector.load %arg5[%c0_46, %c0_47] : memref<256x128xf32, #tpu.memory_space<vmem>>, vector<256x128xf32>
    tpu.vector_store %arg5[%c0_46, %c0_47], %50 {strides = array<i32>} : memref<256x128xf32, #tpu.memory_space<vmem>>, vector<256x128xf32>,
    %52 = vector.extract_strided_slice %3 {offsets = [2, 0, 0], sizes = [16, 16, 4], strides = [1, 1, 1]} : vector<18x18x4xf32> to vector<16x16x4xf32>
    %53 = vector.shape_cast %52 : vector<16x16x4xf32> to vector<256x4xf32>
    %c6 = arith.constant 6 : index
    %c0_48 = arith.constant 0 : index
    %c0_49 = arith.constant 0 : index
    %54 = vector.load %arg2[%c6, %c0_48, %c0_49] : memref<9x4x128xf32, #tpu.memory_space<vmem>>, vector<1x4x128xf32>
    %55 = vector.shape_cast %54 : vector<1x4x128xf32> to vector<4x128xf32>
    %c0_50 = arith.constant 0 : index
    %c0_51 = arith.constant 0 : index
    %56 = vector.load %arg5[%c0_50, %c0_51] : memref<256x128xf32, #tpu.memory_space<vmem>>, vector<256x128xf32>
    %cst_52 = arith.constant dense<0.000000e+00> : vector<256x128xf32>
    %57 = tpu.matmul %53, %55, %cst_52 {dimension_numbers = #tpu.dot_dimension_numbers<[1], [0], [0], [1], [0, 0, 1, 1], [], []>} : vector<256x4xf32>, vector<4x128xf32>, vector<256x128xf32> -> vector<256x128xf32>
    %58 = arith.addf %56, %57 : vector<256x128xf32>
    %c0_53 = arith.constant 0 : index
    %c0_54 = arith.constant 0 : index
    %59 = vector.load %arg5[%c0_53, %c0_54] : memref<256x128xf32, #tpu.memory_space<vmem>>, vector<256x128xf32>
    tpu.vector_store %arg5[%c0_53, %c0_54], %58 {strides = array<i32>} : memref<256x128xf32, #tpu.memory_space<vmem>>, vector<256x128xf32>,
    %60 = vector.extract_strided_slice %3 {offsets = [2, 1, 0], sizes = [16, 16, 4], strides = [1, 1, 1]} : vector<18x18x4xf32> to vector<16x16x4xf32>
    %61 = vector.shape_cast %60 : vector<16x16x4xf32> to vector<256x4xf32>
    %c7 = arith.constant 7 : index
    %c0_55 = arith.constant 0 : index
    %c0_56 = arith.constant 0 : index
    %62 = vector.load %arg2[%c7, %c0_55, %c0_56] : memref<9x4x128xf32, #tpu.memory_space<vmem>>, vector<1x4x128xf32>
    %63 = vector.shape_cast %62 : vector<1x4x128xf32> to vector<4x128xf32>
    %c0_57 = arith.constant 0 : index
    %c0_58 = arith.constant 0 : index
    %64 = vector.load %arg5[%c0_57, %c0_58] : memref<256x128xf32, #tpu.memory_space<vmem>>, vector<256x128xf32>
    %cst_59 = arith.constant dense<0.000000e+00> : vector<256x128xf32>
    %65 = tpu.matmul %61, %63, %cst_59 {dimension_numbers = #tpu.dot_dimension_numbers<[1], [0], [0], [1], [0, 0, 1, 1], [], []>} : vector<256x4xf32>, vector<4x128xf32>, vector<256x128xf32> -> vector<256x128xf32>
    %66 = arith.addf %64, %65 : vector<256x128xf32>
    %c0_60 = arith.constant 0 : index
    %c0_61 = arith.constant 0 : index
    %67 = vector.load %arg5[%c0_60, %c0_61] : memref<256x128xf32, #tpu.memory_space<vmem>>, vector<256x128xf32>
    tpu.vector_store %arg5[%c0_60, %c0_61], %66 {strides = array<i32>} : memref<256x128xf32, #tpu.memory_space<vmem>>, vector<256x128xf32>,
    %68 = vector.extract_strided_slice %3 {offsets = [2, 2, 0], sizes = [16, 16, 4], strides = [1, 1, 1]} : vector<18x18x4xf32> to vector<16x16x4xf32>
    %69 = vector.shape_cast %68 : vector<16x16x4xf32> to vector<256x4xf32>
    %c8 = arith.constant 8 : index
    %c0_62 = arith.constant 0 : index
    %c0_63 = arith.constant 0 : index
    %70 = vector.load %arg2[%c8, %c0_62, %c0_63] : memref<9x4x128xf32, #tpu.memory_space<vmem>>, vector<1x4x128xf32>
    %71 = vector.shape_cast %70 : vector<1x4x128xf32> to vector<4x128xf32>
    %c0_64 = arith.constant 0 : index
    %c0_65 = arith.constant 0 : index
    %72 = vector.load %arg5[%c0_64, %c0_65] : memref<256x128xf32, #tpu.memory_space<vmem>>, vector<256x128xf32>
    %cst_66 = arith.constant dense<0.000000e+00> : vector<256x128xf32>
    %73 = tpu.matmul %69, %71, %cst_66 {dimension_numbers = #tpu.dot_dimension_numbers<[1], [0], [0], [1], [0, 0, 1, 1], [], []>} : vector<256x4xf32>, vector<4x128xf32>, vector<256x128xf32> -> vector<256x128xf32>
    %74 = arith.addf %72, %73 : vector<256x128xf32>
    %c0_67 = arith.constant 0 : index
    %c0_68 = arith.constant 0 : index
    %75 = vector.load %arg5[%c0_67, %c0_68] : memref<256x128xf32, #tpu.memory_space<vmem>>, vector<256x128xf32>
    tpu.vector_store %arg5[%c0_67, %c0_68], %74 {strides = array<i32>} : memref<256x128xf32, #tpu.memory_space<vmem>>, vector<256x128xf32>,
    %c0_69 = arith.constant 0 : index
    %c0_70 = arith.constant 0 : index
    %76 = vector.load %arg5[%c0_69, %c0_70] : memref<256x128xf32, #tpu.memory_space<vmem>>, vector<256x128xf32>
    %cst_71 = arith.constant dense<0.000000e+00> : vector<128xf32>
    %77 = vector.multi_reduction <add>, %76, %cst_71 [0] : vector<256x128xf32> to vector<128xf32>
    %78 = vector.shape_cast %77 : vector<128xf32> to vector<1x128xf32>
    %79 = arith.mulf %76, %76 : vector<256x128xf32>
    %cst_72 = arith.constant dense<0.000000e+00> : vector<128xf32>
    %80 = vector.multi_reduction <add>, %79, %cst_72 [0] : vector<256x128xf32> to vector<128xf32>
    %81 = vector.shape_cast %80 : vector<128xf32> to vector<1x128xf32>
    %82 = tpu.concatenate %78, %81 in 0 : vector<1x128xf32>, vector<1x128xf32> -> vector<2x128xf32>
    %c0_73 = arith.constant 0 : index
    %c0_74 = arith.constant 0 : index
    %c0_75 = arith.constant 0 : index
    %83 = vector.load %arg4[%c0_73, %c0_74, %c0_75] : memref<1x2x128xf32, #tpu.memory_space<vmem>>, vector<1x2x128xf32>
    %84 = vector.shape_cast %83 : vector<1x2x128xf32> to vector<2x128xf32>
    %85 = vector.shape_cast %82 : vector<2x128xf32> to vector<1x2x128xf32>
    tpu.vector_store %arg4[%c0_73, %c0_74, %c0_75], %85 {strides = array<i32>} : memref<1x2x128xf32, #tpu.memory_space<vmem>>, vector<1x2x128xf32>,
    %86 = tpu.transpose %76, [1, 0] : vector<256x128xf32> -> vector<128x256xf32>
    %87 = vector.extract_strided_slice %86 {offsets = [0, 0], sizes = [16, 256], strides = [1, 1]} : vector<128x256xf32> to vector<16x256xf32>
    %c0_76 = arith.constant 0 : index
    %c0_77 = arith.constant 0 : index
    %c0_78 = arith.constant 0 : index
    %88 = vector.load %arg3[%c0_76, %c0_77, %c0_78] : memref<1x16x256xf32, #tpu.memory_space<vmem>>, vector<1x16x256xf32>
    %89 = vector.shape_cast %88 : vector<1x16x256xf32> to vector<16x256xf32>
    %90 = vector.shape_cast %87 : vector<16x256xf32> to vector<1x16x256xf32>
    tpu.vector_store %arg3[%c0_76, %c0_77, %c0_78], %90 {strides = array<i32>} : memref<1x16x256xf32, #tpu.memory_space<vmem>>, vector<1x16x256xf32>,
    return
  }
  func.func @transform_0(%arg0: i32) -> (i32, i32, i32, i32) {
    %c0_i32 = arith.constant 0 : i32
    %c0_i32_0 = arith.constant 0 : i32
    %c0_i32_1 = arith.constant 0 : i32
    %c0_i32_2 = arith.constant 0 : i32
    return %arg0, %c0_i32, %c0_i32_0, %c0_i32_1 : i32, i32, i32, i32
  }
  func.func @transform_1(%arg0: i32) -> (i32, i32, i32) {
    %c0_i32 = arith.constant 0 : i32
    %c0_i32_0 = arith.constant 0 : i32
    %c0_i32_1 = arith.constant 0 : i32
    %c0_i32_2 = arith.constant 0 : i32
    return %c0_i32, %c0_i32_0, %c0_i32_1 : i32, i32, i32
  }
  func.func @transform_2(%arg0: i32) -> (i32, i32, i32) {
    %c0_i32 = arith.constant 0 : i32
    %c0_i32_0 = arith.constant 0 : i32
    %c0_i32_1 = arith.constant 0 : i32
    return %arg0, %c0_i32, %c0_i32_0 : i32, i32, i32
  }
  func.func @transform_3(%arg0: i32) -> (i32, i32, i32) {
    %c0_i32 = arith.constant 0 : i32
    %c0_i32_0 = arith.constant 0 : i32
    %c0_i32_1 = arith.constant 0 : i32
    return %arg0, %c0_i32, %c0_i32_0 : i32, i32, i32
  }
}

</mosaic_0001>

<bundles_post_ra>
// kernel: tpu_custom_call.1
= control target key start
LH: loop header
LB: loop body
LE: loop exit
PB: predicated region body
PF: predicated region fallthrough
CT: control target
= control target key end

     0   :  { %9 = vsyncpa [#allocation4], 0  ;;  %s4789_s0 = inlined_call_operand.vmem [shape: f32[2,18,18,4], index: 0, kind: input, shape index: {}]   ;;  %s4790_s1 = inlined_call_operand.vmem [shape: f32[9,4,128], index: 1, kind: input, shape index: {}]   ;;  %s4791_s2 = inlined_call_operand.hbm [shape: f32[2,16,256], index: 2, kind: output, shape index: {0}]   ;;  %s4792_s3 = inlined_call_operand.hbm [shape: f32[2,2,128], index: 3, kind: output, shape index: {1}]  }
   0x1   :  { %11 = vsyncpa [#allocation4 + $0x1], 0 }
   0x2   :  { %12 = vsyncpa [#allocation6], 0 }
   0x3   :  { %14 = vsyncpa [#allocation6 + $0x1], 0  ;;  %s3500_s12 = smov 0   ;;  %s3502_s13 = smov 0  }
   0x4   :  { %s3504_s14 = smov 0   ;;  %s3506_s15 = smov 0  }
   0x5 LB: > { %s3521_s16 = sadd.s32 4294967295, %s3476_s15   ;;  %s2984_s17 = sadd.s32 4294967294, %s3476_s15   ;;  %s3476_s15 = sphi %s3506_s15, %s4917_s15   ;;  %s3472_s14 = sphi %s3504_s14, %s4916_s14   ;;  %s3468_s13 = sphi %s3502_s13, %s4915_s13   ;;  %s3464_s12 = sphi %s3500_s12, %s4914_s12  }
   0x6   : > { %s3525_s18 = sadd.s32 1, %s3476_s15   ;;  %s74_s19 = sadd.s32 1, %s3472_s14 }
   0x7   : > { %s71_s20 = ssub.s32 %s3476_s15, %s3525_s18  ;;  %p84_p0 = scmp.ne.s32.totalorder %s3472_s14, %s3468_s13 }
   0x8   : > { %p72_p1 = scmp.eq.s32.totalorder %s71_s20, 0  ;;  %p85_p2 = scmp.eq.s32.totalorder %s3521_s16, 1 }
   0x9   : > { %p90_p3 = scmp.ne.s32.totalorder %s3468_s13, %s3464_s12  ;;  %p91_p4 = scmp.eq.s32.totalorder %s2984_s17, 1 }
   0xa   : > { %s3536_s21 = scalar_select %p72_p1, %s3472_s14, %s74_s19  }
   0xb   : > { %p3538_p5 = por %p85_p2, %p84_p0  ;;  %p3542_p6 = por %p91_p4, %p90_p3 }
   0xc   : > { %p2987_p7 = scmp.ge.s32.totalorder %s3476_s15, 1  ;;  %p146_p8 = scmp.lt.s32.totalorder %s3476_s15, 3 }
   0xe   : > { %p147_p9 = pnand %p2987_p7, %p146_p8 }
  0x10   : > { %150 = sbr.rel (%p147_p9) target bundleno = 793 (0x319), region = 28 }
  0x15   : > { %v266_v0 = vld [vmem:[%s4790_s1] sm:$0xf]  ;;  %vm396_vm0 = vcmask 1043456   ;;  %p175_p10 = scmp.lt.s32.totalorder %s3521_s16, 1  ;;  %v3058_v1 = vld [vmem:[%s4790_s1 + $0x8] sm:$0xf] }
  0x16   : > { %3304 = vmatpush.msk.msra.mxu1 %vm396_vm0, %v266_v0  ;;  %3305 = vmatpush.msk.msra.mxu2 %vm396_vm0, %v266_v0  ;;  %v3092_v2 = vld [vmem:[%s4790_s1 + $0xc] sm:$0xf]  ;;  %v3024_v3 = vld [vmem:[%s4790_s1 + $0x4] sm:$0xf]  ;;  %v3126_v4 = vld [vmem:[%s4790_s1 + $0x10] sm:$0xf] }
  0x17   : > { %s176_s5 = scalar_select %p175_p10, %s3521_s16, 1  ;;  %3306 = vmatpush.msk.msra.mxu3 %vm396_vm0, %v266_v0  ;;  %2991 = vmatpush.msk.msra.mxu0 %vm396_vm0, %v266_v0  ;;  %vm299_vm1 = vcmask 31744   ;;  %v3194_v25 = vld [vmem:[%s4790_s1 + $0x18] sm:$0xf]  ;;  %v3228_v26 = vld [vmem:[%s4790_s1 + $0x1c] sm:$0xf] }
  0x18   : > { %3059 = vmatpush.msk.msrb.mxu2 %vm396_vm0, %v3058_v1  ;;  %3025 = vmatpush.msk.msrb.mxu1 %vm396_vm0, %v3024_v3  ;;  %v3160_v27 = vld [vmem:[%s4790_s1 + $0x14] sm:$0xf]  ;;  %v3262_v32 = vld [vmem:[%s4790_s1 + $0x20] sm:$0xf]  ;;  %vm593_vm2 = vcmask 1046528   ;;  %vm952_vm3 = vcmask 1045504  }
  0x19   : > { %3093 = vmatpush.msk.msrb.mxu3 %vm396_vm0, %v3092_v2  ;;  %s3307_s8 = smul.u32 432, %s176_s5  ;;  %3127 = vmatpush.msk.msrb.mxu0 %vm396_vm0, %v3126_v4  ;;  %s4731_s29 = sand.u32 1, %s3468_s13   ;;  %vm2783_vm4 = vcmask 1040384  }
  0x1a   : > { %s3300_s30 = sshll.u32 %s3521_s16, 1  ;;  %s2988_s4 = sshll.u32 %s4731_s29, 5 }
  0x1b   : > { %s3576_s11 = scalar_lea.vmem %s4789_s0, %s3307_s8  ;;  %s2989_s5 = sshll.u32 %s4731_s29, 1 }
  0x1c   : > { %v3579_v5 = vld [vmem:[%s3576_s11 + $0x60] sm:$0xff]  ;;  %v3599_v9 = vld [vmem:[%s3576_s11 + $0x68] sm:$0xff]  ;;  %v3619_v13 = vld [vmem:[%s3576_s11 + $0x78] sm:$0xff]  ;;  %s2887_s8 = scalar_lea.hbm %s4792_s3, %s3300_s30  ;;  %s174_s9 = scalar_lea.vmem [#allocation5], %s2989_s5 }
  0x1d   : > { %v3582_v6 = vld [vmem:[%s3576_s11 + $0xc0] sm:$0xff]  ;;  %3000 = vmatmul.msk.f32.vlgmr.msra.gmra.mxu1 %vm299_vm1, %v3579_v5  ;;  %v3602_v10 = vld [vmem:[%s3576_s11 + $0xc8] sm:$0xff]  ;;  %v3622_v14 = vld [vmem:[%s3576_s11 + $0xd8] sm:$0xff]  ;;  %s2889_s10 = sshll.u32 %s174_s9, 4  ;;  %s4739_s17 = scalar_lea.vmem [#allocation3], %s2988_s4  ;;  %s2890_s10 = int_to_ptr.vmem [resolvable:$true] %s2889_s10 }
  0x1e   : > { %v3585_v7 = vld [vmem:[%s3576_s11 + $0x120] sm:$0xff]  ;;  %3008 = vmatmul.msk.f32.vlgmr.msra.gmra.mxu2 %vm299_vm1, %v3582_v6  ;;  %v3605_v11 = vld [vmem:[%s3576_s11 + $0x128] sm:$0xff]  ;;  %v3625_v15 = vld [vmem:[%s3576_s11 + $0x138] sm:$0xff]  ;;  %3161 = vmatpush.msk.msra.mxu1 %vm396_vm0, %v3160_v27  ;;  %s2860_s19 = scalar_lea.sflag [#allocation6], %s4731_s29  ;;  %s3402_s27 = scalar_lea.hbm %s4792_s3, 4 }
  0x1f   : > { %v3592_v8 = vld [vmem:[%s3576_s11] sm:$0xff]  ;;  %3016 = vmatmul.msk.f32.vlgmr.msra.gmra.mxu3 %vm299_vm1, %v3585_v7  ;;  %v3608_v12 = vld [vmem:[%s3576_s11 + $0x8] sm:$0xff]  ;;  %v3628_v16 = vld [vmem:[%s3576_s11 + $0x18] sm:$0xff]  ;;  %3195 = vmatpush.msk.msra.mxu2 %vm396_vm0, %v3194_v25 }
  0x20   : > { %2992 = vmatmul.msk.f32.vlgmr.msra.gmra.mxu0 %vm299_vm1, %v3592_v8  ;;  %v3639_v17 = vld [vmem:[%s3576_s11 + $0x80] sm:$0xff]  ;;  %v3659_v21 = vld [vmem:[%s3576_s11 + $0x90] sm:$0xff]  ;;  %3229 = vmatpush.msk.msra.mxu3 %vm396_vm0, %v3228_v26  ;;  %v3691_v28 = vld [vmem:[%s3576_s11 + $0x98] sm:$0xff]  ;;  %v594_v41 = vrot.slane %v3592_v8, 1  ;;  %v953_v42 = vrot.slane %v3592_v8, 2  ;;  %v595_v43 = vrot.slane %v3608_v12, 1 }
  0x21   : > { %v3642_v18 = vld [vmem:[%s3576_s11 + $0xe0] sm:$0xff]  ;;  %v3662_v22 = vld [vmem:[%s3576_s11 + $0xf0] sm:$0xff]  ;;  %v3694_v29 = vld [vmem:[%s3576_s11 + $0xf8] sm:$0xff]  ;;  %3263 = vmatpush.msk.msra.mxu0 %vm396_vm0, %v3262_v32  ;;  %v954_v44 = vrot.slane %v3608_v12, 2  ;;  %v599_v45 = vrot.slane %v3628_v16, 1  ;;  %v958_v58 = vrot.slane %v3628_v16, 2 }
  0x22   : > { %v3645_v19 = vld [vmem:[%s3576_s11 + $0x140] sm:$0xff]  ;;  %v3665_v23 = vld [vmem:[%s3576_s11 + $0x150] sm:$0xff]  ;;  %v3697_v30 = vld [vmem:[%s3576_s11 + $0x158] sm:$0xff]  ;;  %v596_v47 = vsel %vm593_vm2, %v594_v41, %v595_v43 }
  0x23   : > { %v3648_v20 = vld [vmem:[%s3576_s11 + $0x20] sm:$0xff]  ;;  %v3668_v24 = vld [vmem:[%s3576_s11 + $0x30] sm:$0xff]  ;;  %v3700_v31 = vld [vmem:[%s3576_s11 + $0x38] sm:$0xff]  ;;  %v955_v48 = vsel %vm952_vm3, %v953_v42, %v954_v44 }
  0x24   : > { %v3715_v33 = vld [vmem:[%s3576_s11 + $0xa8] sm:$0xff]  ;;  %v3735_v37 = vld [vmem:[%s3576_s11 + $0xb0] sm:$0xff]  ;;  %v600_v46 = vrot.slane %v3648_v20, 1  ;;  %v959_v59 = vrot.slane %v3648_v20, 2  ;;  %v604_v60 = vrot.slane %v3668_v24, 1  ;;  %v605_v61 = vrot.slane %v3700_v31, 1 }
  0x25   : > { %3001 = vmatmul.msk.f32.gmra.mxu1 %vm299_vm1, %v3599_v9  ;;  %v3718_v34 = vld [vmem:[%s3576_s11 + $0x108] sm:$0xff]  ;;  %v3738_v38 = vld [vmem:[%s3576_s11 + $0x110] sm:$0xff]  ;;  %v220_v0 = vld [vmem:[%s3576_s11 + $0x40] sm:$0x3]  ;;  %v963_v8 = vrot.slane %v3668_v24, 2 }
  0x26   : > { %3009 = vmatmul.msk.f32.gmra.mxu2 %vm299_vm1, %v3602_v10  ;;  %v3721_v35 = vld [vmem:[%s3576_s11 + $0x168] sm:$0xff]  ;;  %v3741_v39 = vld [vmem:[%s3576_s11 + $0x170] sm:$0xff]  ;;  %v601_v50 = vsel %vm593_vm2, %v599_v45, %v600_v46  ;;  %v3783_v62 = vsel %vm952_vm3, %v958_v58, %v959_v59  ;;  %v3786_v63 = vsel %vm593_vm2, %v604_v60, %v605_v61  ;;  %v607_v2 = vrot.slane %v220_v0, 1  ;;  %v223_v27 = vld [vmem:[%s3576_s11 + $0x58] sm:$0x3] }
  0x27   : > { %3017 = vmatmul.msk.f32.gmra.mxu3 %vm299_vm1, %v3605_v11  ;;  %v3724_v36 = vld [vmem:[%s3576_s11 + $0x48] sm:$0xff]  ;;  %v3744_v40 = vld [vmem:[%s3576_s11 + $0x50] sm:$0xff]  ;;  %v615_v45 = vrot.slane %v3599_v9, 1 }
  0x28   : > { %2993 = vmatmul.msk.f32.gmra.mxu0 %vm299_vm1, %v3608_v12  ;;  %v214_v49 = vld [vmem:[%s3576_s11 + $0x10] sm:$0x3]  ;;  %v217_v51 = vld [vmem:[%s3576_s11 + $0x28] sm:$0x3]  ;;  %v3800_v4 = vsel %vm593_vm2, %v605_v61, %v607_v2  ;;  %v964_v12 = vrot.slane %v3700_v31, 2  ;;  %v968_v42 = vrot.slane %v3724_v36, 2 }
  0x29   : > { %v597_v52 = vrot.slane %v214_v49, 1  ;;  %v956_v53 = vrot.slane %v214_v49, 2  ;;  %v602_v54 = vrot.slane %v217_v51, 1  ;;  %v961_v1 = vrot.slane %v217_v51, 2 }
  0x2a   : > { %v3814_v25 = vsel %vm952_vm3, %v963_v8, %v964_v12  ;;  %v973_v51 = vrot.slane %v3579_v5, 2 }
  0x2b   : > { %v598_v55 = vsel %vm593_vm2, %v595_v43, %v597_v52  ;;  %v957_v56 = vsel %vm952_vm3, %v954_v44, %v956_v53  ;;  %v603_v57 = vsel %vm593_vm2, %v600_v46, %v602_v54  ;;  %v3797_v3 = vsel %vm952_vm3, %v959_v59, %v961_v1 }
  0x2c   : > { %v969_v43 = vrot.slane %v3744_v40, 2  ;;  %v614_v44 = vrot.slane %v3579_v5, 1  ;;  %v974_v52 = vrot.slane %v3599_v9, 2  ;;  %v619_v53 = vrot.slane %v3619_v13, 1 }
  0x2d   : > { %3002 = vmatmul.msk.f32.gmra.mxu1 %vm299_vm1, %v3619_v13  ;;  %v620_v54 = vrot.slane %v3639_v17, 1 }
  0x2e   : > { %3010 = vmatmul.msk.f32.gmra.mxu2 %vm299_vm1, %v3622_v14  ;;  %v3847_v46 = vsel %vm952_vm3, %v968_v42, %v969_v43 }
  0x2f   : > { %3018 = vmatmul.msk.f32.gmra.mxu3 %vm299_vm1, %v3625_v15  ;;  %v3887_v58 = vsel %vm593_vm2, %v619_v53, %v620_v54 }
  0x30   : > { %2994 = vmatmul.msk.f32.gmra.mxu0 %vm299_vm1, %v3628_v16  ;;  %4827 = vst [vmem:[#allocation12_spill] sm:$0xff] %v3887_v58 }
  0x35   : > { %3003 = vmatmul.msk.f32.gmra.mxu1 %vm299_vm1, %v3639_v17 }
  0x36   : > { %3011 = vmatmul.msk.f32.gmra.mxu2 %vm299_vm1, %v3642_v18 }
  0x37   : > { %3019 = vmatmul.msk.f32.gmra.mxu3 %vm299_vm1, %v3645_v19 }
  0x38   : > { %2995 = vmatmul.msk.f32.gmra.mxu0 %vm299_vm1, %v3648_v20 }
  0x3d   : > { %3004 = vmatmul.msk.f32.gmra.mxu1 %vm299_vm1, %v3659_v21 }
  0x3e   : > { %3012 = vmatmul.msk.f32.gmra.mxu2 %vm299_vm1, %v3662_v22 }
  0x3f   : > { %3020 = vmatmul.msk.f32.gmra.mxu3 %vm299_vm1, %v3665_v23 }
  0x40   : > { %2996 = vmatmul.msk.f32.gmra.mxu0 %vm299_vm1, %v3668_v24 }
  0x45   : > { %3005 = vmatmul.msk.f32.gmra.mxu1 %vm299_vm1, %v3691_v28 }
  0x46   : > { %3013 = vmatmul.msk.f32.gmra.mxu2 %vm299_vm1, %v3694_v29 }
  0x47   : > { %3021 = vmatmul.msk.f32.gmra.mxu3 %vm299_vm1, %v3697_v30 }
  0x48   : > { %2997 = vmatmul.msk.f32.gmra.mxu0 %vm299_vm1, %v3700_v31 }
  0x4d   : > { %3006 = vmatmul.msk.f32.gmra.mxu1 %vm299_vm1, %v3715_v33 }
  0x4e   : > { %3014 = vmatmul.msk.f32.gmra.mxu2 %vm299_vm1, %v3718_v34 }
  0x4f   : > { %3022 = vmatmul.msk.f32.gmra.mxu3 %vm299_vm1, %v3721_v35 }
  0x50   : > { %2998 = vmatmul.msk.f32.gmra.mxu0 %vm299_vm1, %v3724_v36 }
  0x55   : > { %3007 = vmatmul.msk.f32.gmra.mxu1 %vm299_vm1, %v3735_v37 }
  0x56   : > { %3015 = vmatmul.msk.f32.gmra.mxu2 %vm299_vm1, %v3738_v38 }
  0x57   : > { %3023 = vmatmul.msk.f32.gmra.mxu3 %vm299_vm1, %v3741_v39 }
  0x58   : > { %2999 = vmatmul.msk.f32.gmra.mxu0 %vm299_vm1, %v3744_v40 }
  0x5d   : > { %3026 = vmatmul.msk.f32.vlgmr.msrb.gmra.mxu1 %vm299_vm1, %v596_v47  ;;  %v3850_v47 = vsel %vm593_vm2, %v614_v44, %v615_v45 }
  0x5e   : > { %3060 = vmatmul.msk.f32.vlgmr.msrb.gmra.mxu2 %vm299_vm1, %v955_v48  ;;  %4824 = vst [vmem:[#allocation9_spill] sm:$0xff] %v3850_v47  ;;  %v226_v48 = vld [vmem:[%s3576_s11 + $0x70] sm:$0x3] }
  0x5f   : > { %3094 = vmatmul.msk.f32.vlgmr.msrb.gmra.mxu3 %vm299_vm1, %v3628_v16  ;;  %v609_v16 = vrot.slane %v3724_v36, 1 }
  0x60   : > { %3128 = vmatmul.msk.f32.vlgmr.msrb.gmra.mxu0 %vm299_vm1, %v601_v50 }
  0x65   : > { %3027 = vmatmul.msk.f32.gmra.mxu1 %vm299_vm1, %v598_v55 }
  0x66   : > { %3061 = vmatmul.msk.f32.gmra.mxu2 %vm299_vm1, %v957_v56  ;;  %v3882_v56 = vsel %vm952_vm3, %v973_v51, %v974_v52 }
  0x67   : > { %3095 = vmatmul.msk.f32.gmra.mxu3 %vm299_vm1, %v3648_v20  ;;  %v610_v20 = vrot.slane %v3744_v40, 1  ;;  %4826 = vst [vmem:[#allocation11_spill] sm:$0xff] %v3882_v56 }
  0x68   : > { %3129 = vmatmul.msk.f32.gmra.mxu0 %vm299_vm1, %v603_v57 }
  0x69   : > { %v3817_v26 = vsel %vm593_vm2, %v609_v16, %v610_v20  ;;  %v979_v16 = vrot.slane %v3639_v17, 2 }
  0x6d   : > { %3028 = vmatmul.msk.f32.gmra.mxu1 %vm299_vm1, %v601_v50 }
  0x6e   : > { %3062 = vmatmul.msk.f32.gmra.mxu2 %vm299_vm1, %v3783_v62 }
  0x6f   : > { %3096 = vmatmul.msk.f32.gmra.mxu3 %vm299_vm1, %v3668_v24  ;;  %v966_v24 = vrot.slane %v220_v0, 2 }
  0x70   : > { %3130 = vmatmul.msk.f32.gmra.mxu0 %vm299_vm1, %v3786_v63 }
  0x71   : > { %v3829_v32 = vsel %vm952_vm3, %v964_v12, %v966_v24  ;;  %v978_v12 = vrot.slane %v3619_v13, 2 }
  0x75   : > { %3029 = vmatmul.msk.f32.gmra.mxu1 %vm299_vm1, %v603_v57 }
  0x76   : > { %3063 = vmatmul.msk.f32.gmra.mxu2 %vm299_vm1, %v3797_v3 }
  0x77   : > { %3097 = vmatmul.msk.f32.gmra.mxu3 %vm299_vm1, %v3700_v31  ;;  %v612_v31 = vrot.slane %v223_v27, 1 }
  0x78   : > { %3131 = vmatmul.msk.f32.gmra.mxu0 %vm299_vm1, %v3800_v4 }
  0x79   : > { %v3832_v41 = vsel %vm593_vm2, %v610_v20, %v612_v31  ;;  %v624_v20 = vrot.slane %v3659_v21, 1 }
  0x7d   : > { %3030 = vmatmul.msk.f32.gmra.mxu1 %vm299_vm1, %v3786_v63 }
  0x7e   : > { %3064 = vmatmul.msk.f32.gmra.mxu2 %vm299_vm1, %v3814_v25 }
  0x7f   : > { %3098 = vmatmul.msk.f32.gmra.mxu3 %vm299_vm1, %v3724_v36  ;;  %v971_v36 = vrot.slane %v223_v27, 2  ;;  %v625_v27 = vrot.slane %v3691_v28, 1 }
  0x80   : > { %3132 = vmatmul.msk.f32.gmra.mxu0 %vm299_vm1, %v3817_v26 }
  0x81   : > { %v3862_v49 = vsel %vm952_vm3, %v969_v43, %v971_v36  ;;  %v3931_v43 = vsel %vm952_vm3, %v978_v12, %v979_v16  ;;  %v630_v12 = vrot.slane %v3735_v37, 1 }
  0x82   : > { %4832 = vst [vmem:[#allocation17_spill] sm:$0xff] %v3931_v43 }
  0x85   : > { %3031 = vmatmul.msk.f32.gmra.mxu1 %vm299_vm1, %v3800_v4 }
  0x86   : > { %3065 = vmatmul.msk.f32.gmra.mxu2 %vm299_vm1, %v3829_v32 }
  0x87   : > { %3099 = vmatmul.msk.f32.gmra.mxu3 %vm299_vm1, %v3744_v40  ;;  %v617_v40 = vrot.slane %v226_v48, 1 }
  0x88   : > { %3133 = vmatmul.msk.f32.gmra.mxu0 %vm299_vm1, %v3832_v41 }
  0x89   : > { %v3865_v50 = vsel %vm593_vm2, %v615_v45, %v617_v40 }
  0x8a   : > { %4825 = vst [vmem:[#allocation10_spill] sm:$0xff] %v3865_v50 }
  0x8d   : > { %3032 = vmatmul.msk.f32.gmra.mxu1 %vm299_vm1, %v3817_v26 }
  0x8e   : > { %3066 = vmatmul.msk.f32.gmra.mxu2 %vm299_vm1, %v3847_v46 }
  0x8f   : > { %3100 = vmatmul.msk.f32.gmra.mxu3 %vm299_vm1, %v3579_v5  ;;  %v229_v5 = vld [vmem:[%s3576_s11 + $0x88] sm:$0x3] }
  0x90   : > { %3134 = vmatmul.msk.f32.gmra.mxu0 %vm299_vm1, %v3850_v47  ;;  %v622_v59 = vrot.slane %v229_v5, 1  ;;  %v981_v45 = vrot.slane %v229_v5, 2  ;;  %v983_v5 = vrot.slane %v3659_v21, 2 }
  0x92   : > { %v3910_v8 = vsel %vm593_vm2, %v620_v54, %v622_v59  ;;  %v629_v59 = vrot.slane %v3715_v33, 1 }
  0x93   : > { %4830 = vst [vmem:[#allocation15_spill] sm:$0xff] %v3910_v8 }
  0x95   : > { %3033 = vmatmul.msk.f32.gmra.mxu1 %vm299_vm1, %v3832_v41 }
  0x96   : > { %3067 = vmatmul.msk.f32.gmra.mxu2 %vm299_vm1, %v3862_v49 }
  0x97   : > { %3101 = vmatmul.msk.f32.gmra.mxu3 %vm299_vm1, %v3599_v9  ;;  %v976_v9 = vrot.slane %v226_v48, 2 }
  0x98   : > { %3135 = vmatmul.msk.f32.gmra.mxu0 %vm299_vm1, %v3865_v50 }
  0x99   : > { %v3905_v1 = vsel %vm952_vm3, %v974_v52, %v976_v9  ;;  %v3954_v52 = vsel %vm952_vm3, %v979_v16, %v981_v45  ;;  %v984_v9 = vrot.slane %v3691_v28, 2 }
  0x9a   : > { %v3879_v55 = vpop.f32.mrf.mxu1  ;;  %4829 = vst [vmem:[#allocation14_spill] sm:$0xff] %v3905_v1 }
  0x9b   : > { %4835 = vst [vmem:[#allocation20_spill] sm:$0xff] %v3954_v52  ;;  %v3980_v45 = vsel %vm952_vm3, %v983_v5, %v984_v9 }
  0x9c   : > { %4838 = vst [vmem:[#allocation23_spill] sm:$0xff] %v3980_v45 }
  0x9d   : > { %v3884_v57 = vpop.f32.mrf.mxu0  ;;  %3034 = vmatmul.msk.f32.gmra.mxu1 %vm299_vm1, %v3850_v47 }
  0x9e   : > { %3068 = vmatmul.msk.f32.gmra.mxu2 %vm299_vm1, %v3882_v56 }
  0x9f   : > { %3102 = vmatmul.msk.f32.gmra.mxu3 %vm299_vm1, %v3619_v13  ;;  %v3936_v13 = vsel %vm593_vm2, %v624_v20, %v625_v27 }
  0xa0   : > { %3136 = vmatmul.msk.f32.gmra.mxu0 %vm299_vm1, %v3887_v58  ;;  %4833 = vst [vmem:[#allocation18_spill] sm:$0xff] %v3936_v13 }
  0xa1   : > { %v3898_v60 = vpop.f32.mrf.mxu2 }
  0xa2   : > { %v3900_v61 = vpop.f32.mrf.mxu3  ;;  %v3902_v0 = vpop.f32.mrf.mxu1 }
  0xa3   : > { %4828 = vst [vmem:[#allocation13_spill] sm:$0xff] %v3900_v61 }
  0xa5   : > { %v3907_v2 = vpop.f32.mrf.mxu0  ;;  %3035 = vmatmul.msk.f32.gmra.mxu1 %vm299_vm1, %v3865_v50 }
  0xa6   : > { %3069 = vmatmul.msk.f32.gmra.mxu2 %vm299_vm1, %v3905_v1 }
  0xa7   : > { %3103 = vmatmul.msk.f32.gmra.mxu3 %vm299_vm1, %v3639_v17  ;;  %v232_v17 = vld [vmem:[%s3576_s11 + $0xa0] sm:$0x3] }
  0xa8   : > { %3137 = vmatmul.msk.f32.gmra.mxu0 %vm299_vm1, %v3910_v8  ;;  %v627_v48 = vrot.slane %v232_v17, 1 }
  0xa9   : > { %v3924_v24 = vpop.f32.mrf.mxu2 }
  0xaa   : > { %v3926_v31 = vpop.f32.mrf.mxu3  ;;  %v3928_v42 = vpop.f32.mrf.mxu1  ;;  %v3959_v54 = vsel %vm593_vm2, %v625_v27, %v627_v48 }
  0xab   : > { %4831 = vst [vmem:[#allocation16_spill] sm:$0xff] %v3926_v31 }
  0xac   : > { %4836 = vst [vmem:[#allocation21_spill] sm:$0xff] %v3959_v54 }
  0xad   : > { %v3933_v44 = vpop.f32.mrf.mxu0  ;;  %3036 = vmatmul.msk.f32.gmra.mxu1 %vm299_vm1, %v3887_v58 }
  0xae   : > { %3070 = vmatmul.msk.f32.gmra.mxu2 %vm299_vm1, %v3931_v43 }
  0xaf   : > { %3104 = vmatmul.msk.f32.gmra.mxu3 %vm299_vm1, %v3659_v21  ;;  %v3985_v21 = vsel %vm593_vm2, %v629_v59, %v630_v12 }
  0xb0   : > { %3138 = vmatmul.msk.f32.gmra.mxu0 %vm299_vm1, %v3936_v13  ;;  %4839 = vst [vmem:[#allocation24_spill] sm:$0xff] %v3985_v21 }
  0xb1   : > { %v3947_v36 = vpop.f32.mrf.mxu2 }
  0xb2   : > { %v3949_v40 = vpop.f32.mrf.mxu3  ;;  %v3951_v51 = vpop.f32.mrf.mxu1 }
  0xb3   : > { %4834 = vst [vmem:[#allocation19_spill] sm:$0xff] %v3949_v40 }
  0xb5   : > { %v3956_v53 = vpop.f32.mrf.mxu0  ;;  %3037 = vmatmul.msk.f32.gmra.mxu1 %vm299_vm1, %v3910_v8 }
  0xb6   : > { %3071 = vmatmul.msk.f32.gmra.mxu2 %vm299_vm1, %v3954_v52 }
  0xb7   : > { %3105 = vmatmul.msk.f32.gmra.mxu3 %vm299_vm1, %v3691_v28  ;;  %v235_v28 = vld [vmem:[%s3576_s11 + $0xb8] sm:$0x3] }
  0xb8   : > { %3139 = vmatmul.msk.f32.gmra.mxu0 %vm299_vm1, %v3959_v54  ;;  %v632_v5 = vrot.slane %v235_v28, 1 }
  0xb9   : > { %v3973_v16 = vpop.f32.mrf.mxu2 }
  0xba   : > { %v3975_v20 = vpop.f32.mrf.mxu3  ;;  %v3977_v27 = vpop.f32.mrf.mxu1 }
  0xbb   : > { %4837 = vst [vmem:[#allocation22_spill] sm:$0xff] %v3975_v20  ;;  %v986_v20 = vrot.slane %v232_v17, 2  ;;  %v988_v17 = vrot.slane %v3715_v33, 2 }
  0xbd   : > { %v3982_v48 = vpop.f32.mrf.mxu0  ;;  %3038 = vmatmul.msk.f32.gmra.mxu1 %vm299_vm1, %v3936_v13  ;;  %v4003_v61 = vsel %vm952_vm3, %v984_v9, %v986_v20  ;;  %v989_v9 = vrot.slane %v3735_v37, 2  ;;  %v634_v20 = vrot.slane %v3582_v6, 1 }
  0xbe   : > { %3072 = vmatmul.msk.f32.gmra.mxu2 %vm299_vm1, %v3980_v45  ;;  %4842 = vst [vmem:[#allocation27_spill] sm:$0xff] %v4003_v61  ;;  %v4008_v45 = vsel %vm593_vm2, %v630_v12, %v632_v5  ;;  %v635_v12 = vrot.slane %v3602_v10, 1 }
  0xbf   : > { %3106 = vmatmul.msk.f32.gmra.mxu3 %vm299_vm1, %v3715_v33  ;;  %4843 = vst [vmem:[#allocation28_spill] sm:$0xff] %v4008_v45 }
  0xc0   : > { %3140 = vmatmul.msk.f32.gmra.mxu0 %vm299_vm1, %v3985_v21  ;;  %v4034_v33 = vsel %vm593_vm2, %v634_v20, %v635_v12 }
  0xc1   : > { %v3996_v40 = vpop.f32.mrf.mxu2  ;;  %4847 = vst [vmem:[#allocation32_spill] sm:$0xff] %v4034_v33 }
  0xc2   : > { %4840 = vst [vmem:[#allocation25_spill] sm:$0xff] %v3996_v40  ;;  %v3998_v31 = vpop.f32.mrf.mxu3  ;;  %v4000_v59 = vpop.f32.mrf.mxu1 }
  0xc3   : > { %4841 = vst [vmem:[#allocation26_spill] sm:$0xff] %v3998_v31 }
  0xc5   : > { %v4005_v13 = vpop.f32.mrf.mxu0  ;;  %3039 = vmatmul.msk.f32.gmra.mxu1 %vm299_vm1, %v3959_v54 }
  0xc6   : > { %3073 = vmatmul.msk.f32.gmra.mxu2 %vm299_vm1, %v4003_v61  ;;  %v4029_v61 = vsel %vm952_vm3, %v988_v17, %v989_v9 }
  0xc7   : > { %3107 = vmatmul.msk.f32.gmra.mxu3 %vm299_vm1, %v3735_v37  ;;  %4846 = vst [vmem:[#allocation31_spill] sm:$0xff] %v4029_v61  ;;  %v238_v37 = vld [vmem:[%s3576_s11 + $0xd0] sm:$0x3] }
  0xc8   : > { %3141 = vmatmul.msk.f32.gmra.mxu0 %vm299_vm1, %v4008_v45  ;;  %v637_v17 = vrot.slane %v238_v37, 1 }
  0xc9   : > { %v4022_v5 = vpop.f32.mrf.mxu2 }
  0xca   : > { %4844 = vst [vmem:[#allocation29_spill] sm:$0xff] %v4022_v5  ;;  %v4024_v31 = vpop.f32.mrf.mxu3  ;;  %v4026_v54 = vpop.f32.mrf.mxu1 }
  0xcb   : > { %4845 = vst [vmem:[#allocation30_spill] sm:$0xff] %v4024_v31  ;;  %v991_v31 = vrot.slane %v235_v28, 2  ;;  %v993_v28 = vrot.slane %v3582_v6, 2 }
  0xcd   : > { %v4031_v52 = vpop.f32.mrf.mxu0  ;;  %3040 = vmatmul.msk.f32.gmra.mxu1 %vm299_vm1, %v3985_v21  ;;  %v4052_v58 = vsel %vm952_vm3, %v989_v9, %v991_v31  ;;  %v994_v31 = vrot.slane %v3602_v10, 2  ;;  %v639_v9 = vrot.slane %v3622_v14, 1 }
  0xce   : > { %3074 = vmatmul.msk.f32.gmra.mxu2 %vm299_vm1, %v4029_v61  ;;  %4850 = vst [vmem:[#allocation35_spill] sm:$0xff] %v4052_v58  ;;  %v4057_v61 = vsel %vm593_vm2, %v635_v12, %v637_v17  ;;  %v640_v12 = vrot.slane %v3642_v18, 1 }
  0xcf   : > { %3108 = vmatmul.msk.f32.gmra.mxu3 %vm299_vm1, %v3582_v6 }
  0xd0   : > { %3142 = vmatmul.msk.f32.gmra.mxu0 %vm299_vm1, %v4034_v33  ;;  %v4079_v6 = vsel %vm593_vm2, %v639_v9, %v640_v12 }
  0xd1   : > { %v4045_v8 = vpop.f32.mrf.mxu2 }
  0xd2   : > { %4848 = vst [vmem:[#allocation33_spill] sm:$0xff] %v4045_v8  ;;  %v4047_v43 = vpop.f32.mrf.mxu3  ;;  %v4049_v20 = vpop.f32.mrf.mxu1 }
  0xd3   : > { %4849 = vst [vmem:[#allocation34_spill] sm:$0xff] %v4047_v43 }
  0xd5   : > { %v4054_v21 = vpop.f32.mrf.mxu0  ;;  %3041 = vmatmul.msk.f32.gmra.mxu1 %vm299_vm1, %v4008_v45 }
  0xd6   : > { %3075 = vmatmul.msk.f32.gmra.mxu2 %vm299_vm1, %v4052_v58  ;;  %v4076_v58 = vsel %vm952_vm3, %v993_v28, %v994_v31 }
  0xd7   : > { %3109 = vmatmul.msk.f32.gmra.mxu3 %vm299_vm1, %v3602_v10  ;;  %4853 = vst [vmem:[#allocation38_spill] sm:$0xff] %v4076_v58  ;;  %v241_v10 = vld [vmem:[%s3576_s11 + $0xe8] sm:$0x3] }
  0xd8   : > { %3143 = vmatmul.msk.f32.gmra.mxu0 %vm299_vm1, %v4057_v61 }
  0xd9   : > { %v4071_v17 = vpop.f32.mrf.mxu2 }
  0xda   : > { %4851 = vst [vmem:[#allocation36_spill] sm:$0xff] %v4071_v17  ;;  %v4073_v43 = vpop.f32.mrf.mxu3  ;;  %v792_v45 = vpop.f32.mrf.mxu1  ;;  %v996_v17 = vrot.slane %v238_v37, 2 }
  0xdb   : > { %4852 = vst [vmem:[#allocation37_spill] sm:$0xff] %v4073_v43  ;;  %v888_v28 = vadd.f32 %v792_v45, %v3884_v57  ;;  %v642_v43 = vrot.slane %v241_v10, 1  ;;  %v998_v57 = vrot.slane %v3622_v14, 2  ;;  %v645_v45 = vrot.slane %v3694_v29, 1 }
  0xdc   : > { %v4092_v40 = vsel %vm952_vm3, %v994_v31, %v996_v17 }
  0xdd   : > { %v1595_v8 = vpop.f32.mrf.mxu0  ;;  %3042 = vmatmul.msk.f32.gmra.mxu1 %vm299_vm1, %v4034_v33 }
  0xde   : > { %3076 = vmatmul.msk.f32.gmra.mxu2 %vm299_vm1, %v4076_v58  ;;  %v4095_v58 = vsel %vm593_vm2, %v640_v12, %v642_v43  ;;  %v644_v43 = vrot.slane %v3662_v22, 1 }
  0xdf   : > { %3110 = vmatmul.msk.f32.gmra.mxu3 %vm299_vm1, %v3622_v14 }
  0xe0   : > { %3144 = vmatmul.msk.f32.gmra.mxu0 %vm299_vm1, %v4079_v6 }
  0xe1   : > { %v1151_v5 = vpop.f32.mrf.mxu2 }
  0xe2   : > { %v1247_v9 = vadd.f32 %v1151_v5, %v888_v28  ;;  %v1371_v1 = vpop.f32.mrf.mxu3  ;;  %v795_v50 = vpop.f32.mrf.mxu1  ;;  %v244_v28 = vld [vmem:[%s3576_s11 + $0x100] sm:$0x3] }
  0xe4   : > { %v1467_v33 = vadd.f32 %v1371_v1, %v1247_v9  ;;  %v999_v1 = vrot.slane %v3642_v18, 2 }
  0xe5   : > { %v1598_v56 = vpop.f32.mrf.mxu0  ;;  %3043 = vmatmul.msk.f32.gmra.mxu1 %vm299_vm1, %v4057_v61 }
  0xe6   : > { %v4097_v47 = vadd.f32 %v1595_v8, %v1467_v33  ;;  %3077 = vmatmul.msk.f32.gmra.mxu2 %vm299_vm1, %v4092_v40  ;;  %v889_v8 = vadd.f32 %v795_v50, %v3907_v2  ;;  %v4113_v12 = vsel %vm952_vm3, %v998_v57, %v999_v1  ;;  %v1001_v50 = vrot.slane %v241_v10, 2 }
  0xe7   : > { %3111 = vmatmul.msk.f32.gmra.mxu3 %vm299_vm1, %v3642_v18  ;;  %v4116_v18 = vsel %vm593_vm2, %v644_v43, %v645_v45  ;;  %v647_v57 = vrot.slane %v244_v28, 1  ;;  %v1004_v10 = vrot.slane %v3694_v29, 2 }
  0xe8   : > { %4854 = vst [vmem:[#allocation39_spill] sm:$0xff] %v4097_v47  ;;  %3145 = vmatmul.msk.f32.gmra.mxu0 %vm299_vm1, %v4095_v58 }
  0xe9   : > { %v1154_v5 = vpop.f32.mrf.mxu2 }
  0xea   : > { %v1248_v33 = vadd.f32 %v1154_v5, %v889_v8  ;;  %v1374_v37 = vpop.f32.mrf.mxu3  ;;  %v798_v31 = vpop.f32.mrf.mxu1 }
  0xeb   : > { %v890_v2 = vadd.f32 %v798_v31, %v3933_v44  ;;  %v1003_v44 = vrot.slane %v3662_v22, 2  ;;  %v650_v31 = vrot.slane %v3738_v38, 1 }
  0xec   : > { %v1468_v17 = vadd.f32 %v1374_v37, %v1248_v33  ;;  %v4131_v33 = vsel %vm952_vm3, %v999_v1, %v1001_v50 }
  0xed   : > { %v1601_v14 = vpop.f32.mrf.mxu0  ;;  %3044 = vmatmul.msk.f32.gmra.mxu1 %vm299_vm1, %v4079_v6 }
  0xee   : > { %v4119_v9 = vadd.f32 %v1598_v56, %v1468_v17  ;;  %3078 = vmatmul.msk.f32.gmra.mxu2 %vm299_vm1, %v4113_v12 }
  0xef   : > { %3112 = vmatmul.msk.f32.gmra.mxu3 %vm299_vm1, %v3662_v22 }
  0xf0   : > { %4855 = vst [vmem:[#allocation40_spill] sm:$0xff] %v4119_v9  ;;  %3146 = vmatmul.msk.f32.gmra.mxu0 %vm299_vm1, %v4116_v18  ;;  %v4134_v9 = vsel %vm593_vm2, %v645_v45, %v647_v57  ;;  %v649_v45 = vrot.slane %v3718_v34, 1 }
  0xf1   : > { %v1157_v8 = vpop.f32.mrf.mxu2 }
  0xf2   : > { %v1249_v43 = vadd.f32 %v1157_v8, %v890_v2  ;;  %v1377_v56 = vpop.f32.mrf.mxu3  ;;  %v801_v5 = vpop.f32.mrf.mxu1  ;;  %v4152_v8 = vsel %vm952_vm3, %v1003_v44, %v1004_v10 }
  0xf3   : > { %v891_v1 = vadd.f32 %v801_v5, %v3956_v53  ;;  %v1006_v53 = vrot.slane %v244_v28, 2  ;;  %v1009_v28 = vrot.slane %v3738_v38, 2 }
  0xf4   : > { %v1469_v37 = vadd.f32 %v1377_v56, %v1249_v43  ;;  %v247_v56 = vld [vmem:[%s3576_s11 + $0x118] sm:$0x3] }
  0xf5   : > { %v1604_v17 = vpop.f32.mrf.mxu0  ;;  %3045 = vmatmul.msk.f32.gmra.mxu1 %vm299_vm1, %v4095_v58  ;;  %v652_v44 = vrot.slane %v247_v56, 1 }
  0xf6   : > { %v4136_v47 = vadd.f32 %v1601_v14, %v1469_v37  ;;  %3079 = vmatmul.msk.f32.gmra.mxu2 %vm299_vm1, %v4131_v33 }
  0xf7   : > { %3113 = vmatmul.msk.f32.gmra.mxu3 %vm299_vm1, %v3694_v29  ;;  %v4155_v29 = vsel %vm593_vm2, %v649_v45, %v650_v31 }
  0xf8   : > { %4856 = vst [vmem:[#allocation41_spill] sm:$0xff] %v4136_v47  ;;  %3147 = vmatmul.msk.f32.gmra.mxu0 %vm299_vm1, %v4134_v9 }
  0xf9   : > { %v1160_v14 = vpop.f32.mrf.mxu2 }
  0xfa   : > { %v1250_v50 = vadd.f32 %v1160_v14, %v891_v1  ;;  %v1380_v2 = vpop.f32.mrf.mxu3  ;;  %v804_v57 = vpop.f32.mrf.mxu1 }
  0xfb   : > { %v892_v5 = vadd.f32 %v804_v57, %v3982_v48  ;;  %v1008_v48 = vrot.slane %v3718_v34, 2  ;;  %v655_v57 = vrot.slane %v3605_v11, 1 }
  0xfc   : > { %v1470_v43 = vadd.f32 %v1380_v2, %v1250_v50  ;;  %v4170_v50 = vsel %vm952_vm3, %v1004_v10, %v1006_v53 }
  0xfd   : > { %v1607_v22 = vpop.f32.mrf.mxu0  ;;  %3046 = vmatmul.msk.f32.gmra.mxu1 %vm299_vm1, %v4116_v18 }
  0xfe   : > { %v4158_v37 = vadd.f32 %v1604_v17, %v1470_v43  ;;  %3080 = vmatmul.msk.f32.gmra.mxu2 %vm299_vm1, %v4152_v8 }
  0xff   : > { %3114 = vmatmul.msk.f32.gmra.mxu3 %vm299_vm1, %v3718_v34 }
 0x100   : > { %4857 = vst [vmem:[#allocation42_spill] sm:$0xff] %v4158_v37  ;;  %3148 = vmatmul.msk.f32.gmra.mxu0 %vm299_vm1, %v4155_v29  ;;  %v4173_v37 = vsel %vm593_vm2, %v650_v31, %v652_v44  ;;  %v654_v31 = vrot.slane %v3585_v7, 1 }
 0x101   : > { %v1163_v1 = vpop.f32.mrf.mxu2 }
 0x102   : > { %v1251_v45 = vadd.f32 %v1163_v1, %v892_v5  ;;  %v1383_v17 = vpop.f32.mrf.mxu3  ;;  %v807_v14 = vpop.f32.mrf.mxu1  ;;  %v4191_v1 = vsel %vm952_vm3, %v1008_v48, %v1009_v28 }
 0x103   : > { %v893_v10 = vadd.f32 %v807_v14, %v4005_v13  ;;  %v1011_v13 = vrot.slane %v247_v56, 2  ;;  %v1014_v56 = vrot.slane %v3605_v11, 2 }
 0x104   : > { %v1471_v2 = vadd.f32 %v1383_v17, %v1251_v45  ;;  %v250_v17 = vld [vmem:[%s3576_s11 + $0x130] sm:$0x3] }
 0x105   : > { %v1610_v43 = vpop.f32.mrf.mxu0  ;;  %3047 = vmatmul.msk.f32.gmra.mxu1 %vm299_vm1, %v4134_v9  ;;  %v657_v48 = vrot.slane %v250_v17, 1 }
 0x106   : > { %v4175_v47 = vadd.f32 %v1607_v22, %v1471_v2  ;;  %3081 = vmatmul.msk.f32.gmra.mxu2 %vm299_vm1, %v4170_v50 }
 0x107   : > { %3115 = vmatmul.msk.f32.gmra.mxu3 %vm299_vm1, %v3738_v38  ;;  %v4194_v38 = vsel %vm593_vm2, %v654_v31, %v655_v57 }
 0x108   : > { %4858 = vst [vmem:[#allocation43_spill] sm:$0xff] %v4175_v47  ;;  %3149 = vmatmul.msk.f32.gmra.mxu0 %vm299_vm1, %v4173_v37 }
 0x109   : > { %v1166_v22 = vpop.f32.mrf.mxu2 }
 0x10a   : > { %v1252_v53 = vadd.f32 %v1166_v22, %v893_v10  ;;  %v1386_v5 = vpop.f32.mrf.mxu3  ;;  %v810_v44 = vpop.f32.mrf.mxu1 }
 0x10b   : > { %v894_v14 = vadd.f32 %v810_v44, %v4031_v52  ;;  %v1013_v52 = vrot.slane %v3585_v7, 2  ;;  %v660_v44 = vrot.slane %v3645_v19, 1 }
 0x10c   : > { %v1472_v45 = vadd.f32 %v1386_v5, %v1252_v53  ;;  %v4209_v53 = vsel %vm952_vm3, %v1009_v28, %v1011_v13 }
 0x10d   : > { %v1613_v34 = vpop.f32.mrf.mxu0  ;;  %3048 = vmatmul.msk.f32.gmra.mxu1 %vm299_vm1, %v4155_v29 }
 0x10e   : > { %v4197_v2 = vadd.f32 %v1610_v43, %v1472_v45  ;;  %3082 = vmatmul.msk.f32.gmra.mxu2 %vm299_vm1, %v4191_v1 }
 0x10f   : > { %3116 = vmatmul.msk.f32.gmra.mxu3 %vm299_vm1, %v3585_v7 }
 0x110   : > { %4859 = vst [vmem:[#allocation44_spill] sm:$0xff] %v4197_v2  ;;  %3150 = vmatmul.msk.f32.gmra.mxu0 %vm299_vm1, %v4194_v38  ;;  %v4212_v2 = vsel %vm593_vm2, %v655_v57, %v657_v48  ;;  %v659_v57 = vrot.slane %v3625_v15, 1 }
 0x111   : > { %v1169_v10 = vpop.f32.mrf.mxu2 }
 0x112   : > { %v1253_v31 = vadd.f32 %v1169_v10, %v894_v14  ;;  %v1389_v43 = vpop.f32.mrf.mxu3  ;;  %v813_v22 = vpop.f32.mrf.mxu1  ;;  %v4230_v10 = vsel %vm952_vm3, %v1013_v52, %v1014_v56 }
 0x113   : > { %v895_v28 = vadd.f32 %v813_v22, %v4054_v21  ;;  %v1016_v21 = vrot.slane %v250_v17, 2  ;;  %v1019_v17 = vrot.slane %v3645_v19, 2 }
 0x114   : > { %v1473_v5 = vadd.f32 %v1389_v43, %v1253_v31  ;;  %v253_v43 = vld [vmem:[%s3576_s11 + $0x148] sm:$0x3] }
 0x115   : > { %v1616_v45 = vpop.f32.mrf.mxu0  ;;  %3049 = vmatmul.msk.f32.gmra.mxu1 %vm299_vm1, %v4173_v37  ;;  %v662_v52 = vrot.slane %v253_v43, 1 }
 0x116   : > { %v4214_v47 = vadd.f32 %v1613_v34, %v1473_v5  ;;  %3083 = vmatmul.msk.f32.gmra.mxu2 %vm299_vm1, %v4209_v53 }
 0x117   : > { %3117 = vmatmul.msk.f32.gmra.mxu3 %vm299_vm1, %v3605_v11  ;;  %v4233_v11 = vsel %vm593_vm2, %v659_v57, %v660_v44 }
 0x118   : > { %4860 = vst [vmem:[#allocation45_spill] sm:$0xff] %v4214_v47  ;;  %3151 = vmatmul.msk.f32.gmra.mxu0 %vm299_vm1, %v4212_v2 }
 0x119   : > { %v1172_v34 = vpop.f32.mrf.mxu2 }
 0x11a   : > { %v1254_v13 = vadd.f32 %v1172_v34, %v895_v28  ;;  %v1392_v14 = vpop.f32.mrf.mxu3  ;;  %v816_v48 = vpop.f32.mrf.mxu1 }
 0x11b   : > { %v896_v22 = vadd.f32 %v816_v48, %v3879_v55  ;;  %v1018_v55 = vrot.slane %v3625_v15, 2  ;;  %v665_v48 = vrot.slane %v3697_v30, 1 }
 0x11c   : > { %v1474_v31 = vadd.f32 %v1392_v14, %v1254_v13  ;;  %v4248_v13 = vsel %vm952_vm3, %v1014_v56, %v1016_v21 }
 0x11d   : > { %v1619_v7 = vpop.f32.mrf.mxu0  ;;  %3050 = vmatmul.msk.f32.gmra.mxu1 %vm299_vm1, %v4194_v38 }
 0x11e   : > { %v4236_v5 = vadd.f32 %v1616_v45, %v1474_v31  ;;  %3084 = vmatmul.msk.f32.gmra.mxu2 %vm299_vm1, %v4230_v10 }
 0x11f   : > { %3118 = vmatmul.msk.f32.gmra.mxu3 %vm299_vm1, %v3625_v15 }
 0x120   : > { %4861 = vst [vmem:[#allocation46_spill] sm:$0xff] %v4236_v5  ;;  %3152 = vmatmul.msk.f32.gmra.mxu0 %vm299_vm1, %v4233_v11  ;;  %v4251_v5 = vsel %vm593_vm2, %v660_v44, %v662_v52  ;;  %v664_v44 = vrot.slane %v3665_v23, 1 }
 0x121   : > { %v1175_v28 = vpop.f32.mrf.mxu2 }
 0x122   : > { %v1255_v57 = vadd.f32 %v1175_v28, %v896_v22  ;;  %v1395_v45 = vpop.f32.mrf.mxu3  ;;  %v819_v34 = vpop.f32.mrf.mxu1  ;;  %v4269_v28 = vsel %vm952_vm3, %v1018_v55, %v1019_v17 }
 0x123   : > { %v897_v56 = vadd.f32 %v819_v34, %v3902_v0  ;;  %v1021_v0 = vrot.slane %v253_v43, 2  ;;  %v1024_v43 = vrot.slane %v3697_v30, 2 }
 0x124   : > { %v1475_v14 = vadd.f32 %v1395_v45, %v1255_v57  ;;  %v256_v45 = vld [vmem:[%s3576_s11 + $0x160] sm:$0x3] }
 0x125   : > { %v1622_v31 = vpop.f32.mrf.mxu0  ;;  %3051 = vmatmul.msk.f32.gmra.mxu1 %vm299_vm1, %v4212_v2  ;;  %v667_v55 = vrot.slane %v256_v45, 1 }
 0x126   : > { %v4253_v47 = vadd.f32 %v1619_v7, %v1475_v14  ;;  %3085 = vmatmul.msk.f32.gmra.mxu2 %vm299_vm1, %v4248_v13 }
 0x127   : > { %3119 = vmatmul.msk.f32.gmra.mxu3 %vm299_vm1, %v3645_v19  ;;  %v4272_v19 = vsel %vm593_vm2, %v664_v44, %v665_v48 }
 0x128   : > { %4862 = vst [vmem:[#allocation47_spill] sm:$0xff] %v4253_v47  ;;  %3153 = vmatmul.msk.f32.gmra.mxu0 %vm299_vm1, %v4251_v5 }
 0x129   : > { %v1178_v7 = vpop.f32.mrf.mxu2 }
 0x12a   : > { %v1256_v21 = vadd.f32 %v1178_v7, %v897_v56  ;;  %v1398_v22 = vpop.f32.mrf.mxu3  ;;  %v822_v52 = vpop.f32.mrf.mxu1 }
 0x12b   : > { %v898_v34 = vadd.f32 %v822_v52, %v3928_v42  ;;  %v1023_v42 = vrot.slane %v3665_v23, 2  ;;  %v670_v52 = vrot.slane %v3741_v39, 1 }
 0x12c   : > { %v1476_v57 = vadd.f32 %v1398_v22, %v1256_v21  ;;  %v4287_v21 = vsel %vm952_vm3, %v1019_v17, %v1021_v0 }
 0x12d   : > { %v1625_v15 = vpop.f32.mrf.mxu0  ;;  %3052 = vmatmul.msk.f32.gmra.mxu1 %vm299_vm1, %v4233_v11 }
 0x12e   : > { %v4275_v14 = vadd.f32 %v1622_v31, %v1476_v57  ;;  %3086 = vmatmul.msk.f32.gmra.mxu2 %vm299_vm1, %v4269_v28 }
 0x12f   : > { %3120 = vmatmul.msk.f32.gmra.mxu3 %vm299_vm1, %v3665_v23 }
 0x130   : > { %4863 = vst [vmem:[#allocation48_spill] sm:$0xff] %v4275_v14  ;;  %3154 = vmatmul.msk.f32.gmra.mxu0 %vm299_vm1, %v4272_v19  ;;  %v4290_v14 = vsel %vm593_vm2, %v665_v48, %v667_v55  ;;  %v669_v48 = vrot.slane %v3721_v35, 1 }
 0x131   : > { %v1181_v56 = vpop.f32.mrf.mxu2 }
 0x132   : > { %v1257_v44 = vadd.f32 %v1181_v56, %v898_v34  ;;  %v1401_v31 = vpop.f32.mrf.mxu3  ;;  %v825_v7 = vpop.f32.mrf.mxu1  ;;  %v4308_v56 = vsel %vm952_vm3, %v1023_v42, %v1024_v43 }
 0x133   : > { %v899_v17 = vadd.f32 %v825_v7, %v3951_v51  ;;  %v1026_v51 = vrot.slane %v256_v45, 2  ;;  %v4332_v45 = vld [vmem:[%s3576_s11 + $0x188] sm:$0xff] }
 0x134   : > { %v1477_v22 = vadd.f32 %v1401_v31, %v1257_v44  ;;  %v259_v31 = vld [vmem:[%s3576_s11 + $0x178] sm:$0x3] }
 0x135   : > { %v1628_v57 = vpop.f32.mrf.mxu0  ;;  %3053 = vmatmul.msk.f32.gmra.mxu1 %vm299_vm1, %v4251_v5  ;;  %v672_v42 = vrot.slane %v259_v31, 1 }
 0x136   : > { %v4292_v47 = vadd.f32 %v1625_v15, %v1477_v22  ;;  %3087 = vmatmul.msk.f32.gmra.mxu2 %vm299_vm1, %v4287_v21 }
 0x137   : > { %3121 = vmatmul.msk.f32.gmra.mxu3 %vm299_vm1, %v3697_v30  ;;  %v4311_v30 = vsel %vm593_vm2, %v669_v48, %v670_v52 }
 0x138   : > { %4864 = vst [vmem:[#allocation49_spill] sm:$0xff] %v4292_v47  ;;  %3155 = vmatmul.msk.f32.gmra.mxu0 %vm299_vm1, %v4290_v14 }
 0x139   : > { %v1184_v15 = vpop.f32.mrf.mxu2 }
 0x13a   : > { %v1258_v0 = vadd.f32 %v1184_v15, %v899_v17  ;;  %v1404_v34 = vpop.f32.mrf.mxu3  ;;  %v828_v55 = vpop.f32.mrf.mxu1 }
 0x13b   : > { %v900_v7 = vadd.f32 %v828_v55, %v3977_v27  ;;  %v1028_v27 = vrot.slane %v3721_v35, 2 }
 0x13c   : > { %v1478_v44 = vadd.f32 %v1404_v34, %v1258_v0  ;;  %v4326_v0 = vsel %vm952_vm3, %v1024_v43, %v1026_v51  ;;  %v1029_v43 = vrot.slane %v3741_v39, 2  ;;  %v1533_v51 = vrot.slane %v4332_v45, 1 }
 0x13d   : > { %v1631_v23 = vpop.f32.mrf.mxu0  ;;  %3054 = vmatmul.msk.f32.gmra.mxu1 %vm299_vm1, %v4272_v19  ;;  %4866 = vst [vmem:[#allocation51_spill] sm:$0xff] %v4326_v0 }
 0x13e   : > { %v4314_v22 = vadd.f32 %v1628_v57, %v1478_v44  ;;  %3088 = vmatmul.msk.f32.gmra.mxu2 %vm299_vm1, %v4308_v56 }
 0x13f   : > { %3122 = vmatmul.msk.f32.gmra.mxu3 %vm299_vm1, %v3721_v35 }
 0x140   : > { %4865 = vst [vmem:[#allocation50_spill] sm:$0xff] %v4314_v22  ;;  %3156 = vmatmul.msk.f32.gmra.mxu0 %vm299_vm1, %v4311_v30  ;;  %v4329_v22 = vsel %vm593_vm2, %v670_v52, %v672_v42  ;;  %v4345_v52 = vld [vmem:[%s3576_s11 + $0x180] sm:$0xff] }
 0x141   : > { %v1187_v57 = vpop.f32.mrf.mxu2 }
 0x142   : > { %v1259_v17 = vadd.f32 %v1187_v57, %v900_v7  ;;  %v1407_v48 = vpop.f32.mrf.mxu3  ;;  %v831_v15 = vpop.f32.mrf.mxu1 }
 0x143   : > { %v901_v55 = vadd.f32 %v831_v15, %v4000_v59  ;;  %v1031_v59 = vrot.slane %v259_v31, 2 }
 0x144   : > { %v1479_v34 = vadd.f32 %v1407_v48, %v1259_v17  ;;  %v4353_v48 = vsel %vm952_vm3, %v1028_v27, %v1029_v43 }
 0x145   : > { %v1634_v44 = vpop.f32.mrf.mxu0  ;;  %3055 = vmatmul.msk.f32.gmra.mxu1 %vm299_vm1, %v4290_v14 }
 0x146   : > { %v4334_v47 = vadd.f32 %v1631_v23, %v1479_v34  ;;  %3089 = vmatmul.msk.f32.gmra.mxu2 %vm299_vm1, %v4326_v0  ;;  %v1532_v23 = vrot.slane %v4345_v52, 1 }
 0x147   : > { %3123 = vmatmul.msk.f32.gmra.mxu3 %vm299_vm1, %v3741_v39 }
 0x148   : > { %4867 = vst [vmem:[#allocation52_spill] sm:$0xff] %v4334_v47  ;;  %3157 = vmatmul.msk.f32.gmra.mxu0 %vm299_vm1, %v4329_v22  ;;  %v4356_v34 = vsel %vm593_vm2, %v1532_v23, %v1533_v51  ;;  %v4359_v47 = vld [vmem:[%s3576_s11 + $0x190] sm:$0x3] }
 0x149   : > { %v1190_v7 = vpop.f32.mrf.mxu2  ;;  %v1535_v27 = vrot.slane %v4359_v47, 1 }
 0x14a   : > { %v1260_v42 = vadd.f32 %v1190_v7, %v901_v55  ;;  %v1410_v57 = vpop.f32.mrf.mxu3  ;;  %v834_v17 = vpop.f32.mrf.mxu1 }
 0x14b   : > { %v902_v15 = vadd.f32 %v834_v17, %v4026_v54 }
 0x14c   : > { %v1480_v35 = vadd.f32 %v1410_v57, %v1260_v42  ;;  %v4374_v42 = vsel %vm952_vm3, %v1029_v43, %v1031_v59 }
 0x14d   : > { %v1637_v39 = vpop.f32.mrf.mxu0  ;;  %3056 = vmatmul.msk.f32.gmra.mxu1 %vm299_vm1, %v4311_v30 }
 0x14e   : > { %v4361_v0 = vadd.f32 %v1634_v44, %v1480_v35  ;;  %3090 = vmatmul.msk.f32.gmra.mxu2 %vm299_vm1, %v4353_v48 }
 0x14f   : > { %3124 = vmatmul.msk.f32.gmra.mxu3 %vm299_vm1, %v4345_v52 }
 0x150   : > { %4868 = vst [vmem:[#allocation53_spill] sm:$0xff] %v4361_v0  ;;  %3158 = vmatmul.msk.f32.gmra.mxu0 %vm299_vm1, %v4356_v34  ;;  %v4377_v0 = vsel %vm593_vm2, %v1533_v51, %v1535_v27 }
 0x151   : > { %v1193_v55 = vpop.f32.mrf.mxu2 }
 0x152   : > { %v1261_v44 = vadd.f32 %v1193_v55, %v902_v15  ;;  %v1413_v23 = vpop.f32.mrf.mxu3  ;;  %v837_v7 = vpop.f32.mrf.mxu1  ;;  %v3354_v55 = vld [vmem:[%s3576_s11 + $0x30] sm:$0xff] }
 0x153   : > { %v903_v54 = vadd.f32 %v837_v7, %v4049_v20 }
 0x154   : > { %v1481_v57 = vadd.f32 %v1413_v23, %v1261_v44 }
 0x155   : > { %v1640_v35 = vpop.f32.mrf.mxu0  ;;  %3057 = vmatmul.msk.f32.gmra.mxu1 %vm299_vm1, %v4329_v22 }
 0x156   : > { %v4379_v31 = vadd.f32 %v1637_v39, %v1481_v57  ;;  %3091 = vmatmul.msk.f32.gmra.mxu2 %vm299_vm1, %v4374_v42 }
 0x157   : > { %3125 = vmatmul.msk.f32.gmra.mxu3 %vm299_vm1, %v4332_v45 }
 0x158   : > { %3159 = vmatmul.msk.f32.gmra.mxu0 %vm299_vm1, %v4377_v0 }
 0x159   : > { %v1196_v43 = vpop.f32.mrf.mxu2 }
 0x15a   : > { %v1262_v17 = vadd.f32 %v1196_v43, %v903_v54  ;;  %v1416_v51 = vpop.f32.mrf.mxu3  ;;  %v840_v59 = vpop.f32.mrf.mxu1 }
 0x15b   : > { %v904_v20 = vadd.f32 %v840_v59, %v3898_v60 }
 0x15c   : > { %v1482_v39 = vadd.f32 %v1416_v51, %v1262_v17 }
 0x15d   : > { %v1643_v15 = vpop.f32.mrf.mxu0  ;;  %3162 = vmatmul.msk.f32.vlgmr.msra.gmra.mxu1 %vm299_vm1, %v3783_v62  ;;  %v3355_v62 = vld [vmem:[%s3576_s11 + $0x38] sm:$0xff] }
 0x15e   : > { %v4390_v27 = vadd.f32 %v1640_v35, %v1482_v39  ;;  %3196 = vmatmul.msk.f32.vlgmr.msra.gmra.mxu2 %vm299_vm1, %v3354_v55 }
 0x15f   : > { %3230 = vmatmul.msk.f32.vlgmr.msra.gmra.mxu3 %vm299_vm1, %v3786_v63 }
 0x160   : > { %3264 = vmatmul.msk.f32.vlgmr.msra.gmra.mxu0 %vm299_vm1, %v3814_v25 }
 0x161   : > { %v1199_v44 = vpop.f32.mrf.mxu2 }
 0x162   : > { %v1263_v23 = vadd.f32 %v1199_v44, %v904_v20  ;;  %v1419_v7 = vpop.f32.mrf.mxu3  ;;  %v843_v57 = vpop.f32.mrf.mxu1 }
 0x163   : > { %v905_v63 = vadd.f32 %v843_v57, %v3924_v24 }
 0x164   : > { %v1483_v35 = vadd.f32 %v1419_v7, %v1263_v23 }
 0x165   : > { %v1646_v54 = vpop.f32.mrf.mxu0  ;;  %3163 = vmatmul.msk.f32.gmra.mxu1 %vm299_vm1, %v3797_v3  ;;  %v3356_v3 = vld [vmem:[%s3576_s11 + $0x48] sm:$0xff] }
 0x166   : > { %v4401_v43 = vadd.f32 %v1643_v15, %v1483_v35  ;;  %3197 = vmatmul.msk.f32.gmra.mxu2 %vm299_vm1, %v3355_v62 }
 0x167   : > { %3231 = vmatmul.msk.f32.gmra.mxu3 %vm299_vm1, %v3800_v4 }
 0x168   : > { %3265 = vmatmul.msk.f32.gmra.mxu0 %vm299_vm1, %v3829_v32 }
 0x169   : > { %v1202_v60 = vpop.f32.mrf.mxu2 }
 0x16a   : > { %v1264_v17 = vadd.f32 %v1202_v60, %v905_v63  ;;  %v1422_v51 = vpop.f32.mrf.mxu3  ;;  %v846_v59 = vpop.f32.mrf.mxu1 }
 0x16b   : > { %v906_v4 = vadd.f32 %v846_v59, %v3947_v36  ;;  %v4870_v59 = vld [vmem:[#allocation11_spill] sm:$0xff] }
 0x16c   : > { %v1484_v39 = vadd.f32 %v1422_v51, %v1264_v17 }
 0x16d   : > { %v1649_v15 = vpop.f32.mrf.mxu0  ;;  %3164 = vmatmul.msk.f32.gmra.mxu1 %vm299_vm1, %v3814_v25  ;;  %v3357_v25 = vld [vmem:[%s3576_s11 + $0x50] sm:$0xff] }
 0x16e   : > { %v4412_v55 = vadd.f32 %v1646_v54, %v1484_v39  ;;  %3198 = vmatmul.msk.f32.gmra.mxu2 %vm299_vm1, %v3356_v3 }
 0x16f   : > { %3232 = vmatmul.msk.f32.gmra.mxu3 %vm299_vm1, %v3817_v26 }
 0x170   : > { %3266 = vmatmul.msk.f32.gmra.mxu0 %vm299_vm1, %v3847_v46 }
 0x171   : > { %v1205_v24 = vpop.f32.mrf.mxu2 }
 0x172   : > { %v1265_v20 = vadd.f32 %v1205_v24, %v906_v4  ;;  %v1425_v44 = vpop.f32.mrf.mxu3  ;;  %v849_v23 = vpop.f32.mrf.mxu1 }
 0x173   : > { %v907_v26 = vadd.f32 %v849_v23, %v3973_v16  ;;  %v4871_v16 = vld [vmem:[#allocation25_spill] sm:$0xff] }
 0x174   : > { %v1485_v7 = vadd.f32 %v1425_v44, %v1265_v20 }
 0x175   : > { %v1652_v57 = vpop.f32.mrf.mxu0  ;;  %3165 = vmatmul.msk.f32.gmra.mxu1 %vm299_vm1, %v3829_v32  ;;  %v3358_v32 = vld [vmem:[%s3576_s11 + $0x60] sm:$0xff] }
 0x176   : > { %v4423_v35 = vadd.f32 %v1649_v15, %v1485_v7  ;;  %3199 = vmatmul.msk.f32.gmra.mxu2 %vm299_vm1, %v3357_v25  ;;  %v4872_v7 = vld [vmem:[#allocation10_spill] sm:$0xff]  ;;  %v4874_v25 = vld [vmem:[#allocation29_spill] sm:$0xff] }
 0x177   : > { %3233 = vmatmul.msk.f32.gmra.mxu3 %vm299_vm1, %v3832_v41  ;;  %v4869_v41 = vld [vmem:[#allocation9_spill] sm:$0xff] }
 0x178   : > { %3267 = vmatmul.msk.f32.gmra.mxu0 %vm299_vm1, %v3862_v49 }
 0x179   : > { %v1208_v36 = vpop.f32.mrf.mxu2 }
 0x17a   : > { %v1266_v54 = vadd.f32 %v1208_v36, %v907_v26  ;;  %v1428_v62 = vpop.f32.mrf.mxu3  ;;  %v852_v63 = vpop.f32.mrf.mxu1 }
 0x17b   : > { %v908_v39 = vadd.f32 %v852_v63, %v4871_v16  ;;  %v4876_v16 = vld [vmem:[#allocation17_spill] sm:$0xff] }
 0x17c   : > { %v1486_v60 = vadd.f32 %v1428_v62, %v1266_v54 }
 0x17d   : > { %v1655_v17 = vpop.f32.mrf.mxu0  ;;  %3166 = vmatmul.msk.f32.gmra.mxu1 %vm299_vm1, %v3847_v46  ;;  %v3359_v46 = vld [vmem:[%s3576_s11 + $0x68] sm:$0xff] }
 0x17e   : > { %v4434_v51 = vadd.f32 %v1652_v57, %v1486_v60  ;;  %3200 = vmatmul.msk.f32.gmra.mxu2 %vm299_vm1, %v3358_v32  ;;  %v4873_v57 = vld [vmem:[#allocation14_spill] sm:$0xff] }
 0x17f   : > { %3234 = vmatmul.msk.f32.gmra.mxu3 %vm299_vm1, %v4869_v41  ;;  %v4875_v41 = vld [vmem:[#allocation12_spill] sm:$0xff] }
 0x180   : > { %3268 = vmatmul.msk.f32.gmra.mxu0 %vm299_vm1, %v4870_v59 }
 0x181   : > { %v1211_v15 = vpop.f32.mrf.mxu2 }
 0x182   : > { %v1267_v3 = vadd.f32 %v1211_v15, %v908_v39  ;;  %v1431_v4 = vpop.f32.mrf.mxu3  ;;  %v855_v24 = vpop.f32.mrf.mxu1  ;;  %v4877_v39 = vld [vmem:[#allocation33_spill] sm:$0xff] }
 0x183   : > { %v909_v26 = vadd.f32 %v855_v24, %v4874_v25  ;;  %v4878_v25 = vld [vmem:[#allocation15_spill] sm:$0xff] }
 0x184   : > { %v1487_v20 = vadd.f32 %v1431_v4, %v1267_v3 }
 0x185   : > { %v1658_v44 = vpop.f32.mrf.mxu0  ;;  %3167 = vmatmul.msk.f32.gmra.mxu1 %vm299_vm1, %v3862_v49  ;;  %v3360_v49 = vld [vmem:[%s3576_s11 + $0x78] sm:$0xff] }
 0x186   : > { %v4445_v23 = vadd.f32 %v1655_v17, %v1487_v20  ;;  %3201 = vmatmul.msk.f32.gmra.mxu2 %vm299_vm1, %v3359_v46 }
 0x187   : > { %3235 = vmatmul.msk.f32.gmra.mxu3 %vm299_vm1, %v4872_v7 }
 0x188   : > { %3269 = vmatmul.msk.f32.gmra.mxu0 %vm299_vm1, %v4873_v57 }
 0x189   : > { %v1214_v36 = vpop.f32.mrf.mxu2 }
 0x18a   : > { %v1268_v54 = vadd.f32 %v1214_v36, %v909_v26  ;;  %v1434_v62 = vpop.f32.mrf.mxu3  ;;  %v858_v63 = vpop.f32.mrf.mxu1  ;;  %v4879_v26 = vld [vmem:[#allocation20_spill] sm:$0xff] }
 0x18b   : > { %v910_v15 = vadd.f32 %v858_v63, %v4877_v39  ;;  %v4880_v36 = vld [vmem:[#allocation36_spill] sm:$0xff] }
 0x18c   : > { %v1488_v60 = vadd.f32 %v1434_v62, %v1268_v54 }
 0x18d   : > { %v1661_v17 = vpop.f32.mrf.mxu0  ;;  %3168 = vmatmul.msk.f32.gmra.mxu1 %vm299_vm1, %v4870_v59  ;;  %v3361_v59 = vld [vmem:[%s3576_s11 + $0x80] sm:$0xff] }
 0x18e   : > { %v4456_v32 = vadd.f32 %v1658_v44, %v1488_v60  ;;  %3202 = vmatmul.msk.f32.gmra.mxu2 %vm299_vm1, %v3360_v49 }
 0x18f   : > { %3236 = vmatmul.msk.f32.gmra.mxu3 %vm299_vm1, %v4875_v41 }
 0x190   : > { %3270 = vmatmul.msk.f32.gmra.mxu0 %vm299_vm1, %v4876_v16 }
 0x191   : > { %v1217_v3 = vpop.f32.mrf.mxu2 }
 0x192   : > { %v1269_v4 = vadd.f32 %v1217_v3, %v910_v15  ;;  %v1437_v24 = vpop.f32.mrf.mxu3  ;;  %v861_v20 = vpop.f32.mrf.mxu1  ;;  %v4881_v15 = vld [vmem:[#allocation18_spill] sm:$0xff]  ;;  %v4882_v3 = vld [vmem:[#allocation23_spill] sm:$0xff] }
 0x193   : > { %v911_v54 = vadd.f32 %v861_v20, %v4880_v36 }
 0x194   : > { %v1489_v44 = vadd.f32 %v1437_v24, %v1269_v4  ;;  %v4883_v4 = vld [vmem:[#allocation13_spill] sm:$0xff] }
 0x195   : > { %v1664_v46 = vpop.f32.mrf.mxu0  ;;  %3169 = vmatmul.msk.f32.gmra.mxu1 %vm299_vm1, %v4873_v57  ;;  %v3362_v57 = vld [vmem:[%s3576_s11 + $0x90] sm:$0xff] }
 0x196   : > { %v4467_v7 = vadd.f32 %v1661_v17, %v1489_v44  ;;  %3203 = vmatmul.msk.f32.gmra.mxu2 %vm299_vm1, %v3361_v59 }
 0x197   : > { %3237 = vmatmul.msk.f32.gmra.mxu3 %vm299_vm1, %v4878_v25 }
 0x198   : > { %3271 = vmatmul.msk.f32.gmra.mxu0 %vm299_vm1, %v4879_v26 }
 0x199   : > { %v1220_v62 = vpop.f32.mrf.mxu2 }
 0x19a   : > { %v1270_v63 = vadd.f32 %v1220_v62, %v911_v54  ;;  %v1440_v60 = vpop.f32.mrf.mxu3  ;;  %v864_v49 = vpop.f32.mrf.mxu1  ;;  %v4884_v62 = vld [vmem:[#allocation21_spill] sm:$0xff] }
 0x19b   : > { %v912_v24 = vadd.f32 %v864_v49, %v4883_v4 }
 0x19c   : > { %v1490_v17 = vadd.f32 %v1440_v60, %v1270_v63  ;;  %v4885_v63 = vld [vmem:[#allocation27_spill] sm:$0xff]  ;;  %v4886_v60 = vld [vmem:[#allocation16_spill] sm:$0xff] }
 0x19d   : > { %v1667_v41 = vpop.f32.mrf.mxu0  ;;  %3170 = vmatmul.msk.f32.gmra.mxu1 %vm299_vm1, %v4876_v16  ;;  %v3363_v16 = vld [vmem:[%s3576_s11 + $0x98] sm:$0xff] }
 0x19e   : > { %v4478_v39 = vadd.f32 %v1664_v46, %v1490_v17  ;;  %3204 = vmatmul.msk.f32.gmra.mxu2 %vm299_vm1, %v3362_v57 }
 0x19f   : > { %3238 = vmatmul.msk.f32.gmra.mxu3 %vm299_vm1, %v4881_v15 }
 0x1a0   : > { %3272 = vmatmul.msk.f32.gmra.mxu0 %vm299_vm1, %v4882_v3 }
 0x1a1   : > { %v1223_v20 = vpop.f32.mrf.mxu2 }
 0x1a2   : > { %v1271_v44 = vadd.f32 %v1223_v20, %v912_v24  ;;  %v1443_v59 = vpop.f32.mrf.mxu3  ;;  %v867_v25 = vpop.f32.mrf.mxu1 }
 0x1a3   : > { %v913_v49 = vadd.f32 %v867_v25, %v4886_v60  ;;  %v4889_v25 = vld [vmem:[#allocation19_spill] sm:$0xff] }
 0x1a4   : > { %v1491_v46 = vadd.f32 %v1443_v59, %v1271_v44  ;;  %v4887_v44 = vld [vmem:[#allocation24_spill] sm:$0xff]  ;;  %v4888_v59 = vld [vmem:[#allocation31_spill] sm:$0xff] }
 0x1a5   : > { %v1670_v36 = vpop.f32.mrf.mxu0  ;;  %3171 = vmatmul.msk.f32.gmra.mxu1 %vm299_vm1, %v4879_v26  ;;  %v3364_v26 = vld [vmem:[%s3576_s11 + $0xa8] sm:$0xff] }
 0x1a6   : > { %v4489_v54 = vadd.f32 %v1667_v41, %v1491_v46  ;;  %3205 = vmatmul.msk.f32.gmra.mxu2 %vm299_vm1, %v3363_v16 }
 0x1a7   : > { %3239 = vmatmul.msk.f32.gmra.mxu3 %vm299_vm1, %v4884_v62 }
 0x1a8   : > { %3273 = vmatmul.msk.f32.gmra.mxu0 %vm299_vm1, %v4885_v63 }
 0x1a9   : > { %v1226_v17 = vpop.f32.mrf.mxu2 }
 0x1aa   : > { %v1272_v57 = vadd.f32 %v1226_v17, %v913_v49  ;;  %v1446_v15 = vpop.f32.mrf.mxu3  ;;  %v870_v4 = vpop.f32.mrf.mxu1 }
 0x1ab   : > { %v914_v46 = vadd.f32 %v870_v4, %v4889_v25  ;;  %v4892_v4 = vld [vmem:[#allocation22_spill] sm:$0xff] }
 0x1ac   : > { %v1492_v41 = vadd.f32 %v1446_v15, %v1272_v57  ;;  %v4890_v15 = vld [vmem:[#allocation28_spill] sm:$0xff] }
 0x1ad   : > { %v1673_v24 = vpop.f32.mrf.mxu0  ;;  %3172 = vmatmul.msk.f32.gmra.mxu1 %vm299_vm1, %v4882_v3  ;;  %v3365_v3 = vld [vmem:[%s3576_s11 + $0xb0] sm:$0xff] }
 0x1ae   : > { %v4500_v20 = vadd.f32 %v1670_v36, %v1492_v41  ;;  %3206 = vmatmul.msk.f32.gmra.mxu2 %vm299_vm1, %v3364_v26  ;;  %v4891_v41 = vld [vmem:[#allocation35_spill] sm:$0xff] }
 0x1af   : > { %3240 = vmatmul.msk.f32.gmra.mxu3 %vm299_vm1, %v4887_v44 }
 0x1b0   : > { %3274 = vmatmul.msk.f32.gmra.mxu0 %vm299_vm1, %v4888_v59 }
 0x1b1   : > { %v1229_v16 = vpop.f32.mrf.mxu2 }
 0x1b2   : > { %v1273_v62 = vadd.f32 %v1229_v16, %v914_v46  ;;  %v1449_v60 = vpop.f32.mrf.mxu3  ;;  %v873_v49 = vpop.f32.mrf.mxu1 }
 0x1b3   : > { %v915_v26 = vadd.f32 %v873_v49, %v4892_v4  ;;  %v4895_v49 = vld [vmem:[#allocation26_spill] sm:$0xff] }
 0x1b4   : > { %v1493_v36 = vadd.f32 %v1449_v60, %v1273_v62 }
 0x1b5   : > { %v1676_v17 = vpop.f32.mrf.mxu0  ;;  %3173 = vmatmul.msk.f32.gmra.mxu1 %vm299_vm1, %v4885_v63  ;;  %v3366_v63 = vld [vmem:[%s3576_s11 + $0xc0] sm:$0xff] }
 0x1b6   : > { %v4511_v57 = vadd.f32 %v1673_v24, %v1493_v36  ;;  %3207 = vmatmul.msk.f32.gmra.mxu2 %vm299_vm1, %v3365_v3  ;;  %v4893_v36 = vld [vmem:[#allocation32_spill] sm:$0xff]  ;;  %v4894_v3 = vld [vmem:[#allocation38_spill] sm:$0xff] }
 0x1b7   : > { %3241 = vmatmul.msk.f32.gmra.mxu3 %vm299_vm1, %v4890_v15 }
 0x1b8   : > { %3275 = vmatmul.msk.f32.gmra.mxu0 %vm299_vm1, %v4891_v41 }
 0x1b9   : > { %v1232_v44 = vpop.f32.mrf.mxu2 }
 0x1ba   : > { %v1274_v25 = vadd.f32 %v1232_v44, %v915_v26  ;;  %v1452_v46 = vpop.f32.mrf.mxu3  ;;  %v876_v16 = vpop.f32.mrf.mxu1 }
 0x1bb   : > { %v916_v15 = vadd.f32 %v876_v16, %v4895_v49  ;;  %v4896_v16 = vld [vmem:[#allocation30_spill] sm:$0xff] }
 0x1bc   : > { %v1494_v24 = vadd.f32 %v1452_v46, %v1274_v25 }
 0x1bd   : > { %v1679_v62 = vpop.f32.mrf.mxu0  ;;  %3174 = vmatmul.msk.f32.gmra.mxu1 %vm299_vm1, %v4888_v59  ;;  %v3367_v59 = vld [vmem:[%s3576_s11 + $0xc8] sm:$0xff] }
 0x1be   : > { %v4522_v60 = vadd.f32 %v1676_v17, %v1494_v24  ;;  %3208 = vmatmul.msk.f32.gmra.mxu2 %vm299_vm1, %v3366_v63 }
 0x1bf   : > { %3242 = vmatmul.msk.f32.gmra.mxu3 %vm299_vm1, %v4893_v36 }
 0x1c0   : > { %3276 = vmatmul.msk.f32.gmra.mxu0 %vm299_vm1, %v4894_v3 }
 0x1c1   : > { %v1235_v4 = vpop.f32.mrf.mxu2 }
 0x1c2   : > { %v1275_v26 = vadd.f32 %v1235_v4, %v916_v15  ;;  %v1455_v44 = vpop.f32.mrf.mxu3  ;;  %v879_v25 = vpop.f32.mrf.mxu1 }
 0x1c3   : > { %v917_v63 = vadd.f32 %v879_v25, %v4896_v16 }
 0x1c4   : > { %v1495_v17 = vadd.f32 %v1455_v44, %v1275_v26 }
 0x1c5   : > { %v1682_v46 = vpop.f32.mrf.mxu0  ;;  %3175 = vmatmul.msk.f32.gmra.mxu1 %vm299_vm1, %v4891_v41  ;;  %v3368_v41 = vld [vmem:[%s3576_s11 + $0xd8] sm:$0xff] }
 0x1c6   : > { %v4533_v24 = vadd.f32 %v1679_v62, %v1495_v17  ;;  %3209 = vmatmul.msk.f32.gmra.mxu2 %vm299_vm1, %v3367_v59 }
 0x1c7   : > { %3243 = vmatmul.msk.f32.gmra.mxu3 %vm299_vm1, %v4057_v61  ;;  %v4897_v61 = vld [vmem:[#allocation34_spill] sm:$0xff] }
 0x1c8   : > { %3277 = vmatmul.msk.f32.gmra.mxu0 %vm299_vm1, %v4092_v40 }
 0x1c9   : > { %v1238_v36 = vpop.f32.mrf.mxu2 }
 0x1ca   : > { %v1276_v49 = vadd.f32 %v1238_v36, %v917_v63  ;;  %v1458_v15 = vpop.f32.mrf.mxu3  ;;  %v882_v4 = vpop.f32.mrf.mxu1 }
 0x1cb   : > { %v918_v25 = vadd.f32 %v882_v4, %v4897_v61 }
 0x1cc   : > { %v1496_v62 = vadd.f32 %v1458_v15, %v1276_v49 }
 0x1cd   : > { %v1685_v26 = vpop.f32.mrf.mxu0  ;;  %3176 = vmatmul.msk.f32.gmra.mxu1 %vm299_vm1, %v4894_v3  ;;  %v3369_v3 = vld [vmem:[%s3576_s11 + $0xe0] sm:$0xff] }
 0x1ce   : > { %v4544_v44 = vadd.f32 %v1682_v46, %v1496_v62  ;;  %3210 = vmatmul.msk.f32.gmra.mxu2 %vm299_vm1, %v3368_v41 }
 0x1cf   : > { %3244 = vmatmul.msk.f32.gmra.mxu3 %vm299_vm1, %v4079_v6  ;;  %v4898_v6 = vld [vmem:[#allocation37_spill] sm:$0xff] }
 0x1d0   : > { %3278 = vmatmul.msk.f32.gmra.mxu0 %vm299_vm1, %v4113_v12 }
 0x1d1   : > { %v1241_v17 = vpop.f32.mrf.mxu2 }
 0x1d2   : > { %v1277_v59 = vadd.f32 %v1241_v17, %v918_v25  ;;  %v1461_v16 = vpop.f32.mrf.mxu3  ;;  %v885_v63 = vpop.f32.mrf.mxu1 }
 0x1d3   : > { %v919_v15 = vadd.f32 %v885_v63, %v4898_v6 }
 0x1d4   : > { %v1497_v46 = vadd.f32 %v1461_v16, %v1277_v59 }
 0x1d5   : > { %v1688_v36 = vpop.f32.mrf.mxu0  ;;  %3177 = vmatmul.msk.f32.gmra.mxu1 %vm299_vm1, %v4092_v40  ;;  %v3370_v40 = vld [vmem:[%s3576_s11 + $0xf0] sm:$0xff] }
 0x1d6   : > { %v4555_v49 = vadd.f32 %v1685_v26, %v1497_v46  ;;  %3211 = vmatmul.msk.f32.gmra.mxu2 %vm299_vm1, %v3369_v3 }
 0x1d7   : > { %3245 = vmatmul.msk.f32.gmra.mxu3 %vm299_vm1, %v4095_v58  ;;  %v4899_v58 = vld [vmem:[#allocation39_spill] sm:$0xff] }
 0x1d8   : > { %3279 = vmatmul.msk.f32.gmra.mxu0 %vm299_vm1, %v4131_v33 }
 0x1d9   : > { %v1244_v4 = vpop.f32.mrf.mxu2 }
 0x1da   : > { %v1278_v62 = vadd.f32 %v1244_v4, %v919_v15  ;;  %v1464_v41 = vpop.f32.mrf.mxu3  ;;  %v1818_v61 = vpop.f32.mrf.mxu1 }
 0x1db   : > { %v1914_v59 = vadd.f32 %v1818_v61, %v4899_v58 }
 0x1dc   : > { %v1498_v26 = vadd.f32 %v1464_v41, %v1278_v62 }
 0x1dd   : > { %v2485_v25 = vpop.f32.mrf.mxu0  ;;  %3178 = vmatmul.msk.f32.gmra.mxu1 %vm299_vm1, %v4113_v12  ;;  %v3371_v12 = vld [vmem:[%s3576_s11 + $0xf8] sm:$0xff] }
 0x1de   : > { %v4566_v17 = vadd.f32 %v1688_v36, %v1498_v26  ;;  %3212 = vmatmul.msk.f32.gmra.mxu2 %vm299_vm1, %v3370_v40 }
 0x1df   : > { %3246 = vmatmul.msk.f32.gmra.mxu3 %vm299_vm1, %v4116_v18  ;;  %v4900_v18 = vld [vmem:[#allocation40_spill] sm:$0xff] }
 0x1e0   : > { %3280 = vmatmul.msk.f32.gmra.mxu0 %vm299_vm1, %v4152_v8 }
 0x1e1   : > { %v2038_v16 = vpop.f32.mrf.mxu2 }
 0x1e2   : > { %v2134_v63 = vadd.f32 %v2038_v16, %v1914_v59  ;;  %v2262_v46 = vpop.f32.mrf.mxu3  ;;  %v1821_v3 = vpop.f32.mrf.mxu1  ;;  %v4901_v59 = vld [vmem:[#allocation41_spill] sm:$0xff] }
 0x1e3   : > { %v1915_v4 = vadd.f32 %v1821_v3, %v4900_v18 }
 0x1e4   : > { %v2358_v36 = vadd.f32 %v2262_v46, %v2134_v63 }
 0x1e5   : > { %v2488_v6 = vpop.f32.mrf.mxu0  ;;  %3179 = vmatmul.msk.f32.gmra.mxu1 %vm299_vm1, %v4131_v33  ;;  %v3372_v33 = vld [vmem:[%s3576_s11 + $0x108] sm:$0xff] }
 0x1e6   : > { %v2581_v15 = vadd.f32 %v2485_v25, %v2358_v36  ;;  %3213 = vmatmul.msk.f32.gmra.mxu2 %vm299_vm1, %v3371_v12 }
 0x1e7   : > { %3247 = vmatmul.msk.f32.gmra.mxu3 %vm299_vm1, %v4134_v9 }
 0x1e8   : > { %3281 = vmatmul.msk.f32.gmra.mxu0 %vm299_vm1, %v4170_v50  ;;  %2786 = vxpose.xlu0.b32.start [1/16] (narrow) %v2581_v15, 16  ;;  %v2714_v9 = vmul.f32 %v2581_v15, %v2581_v15 }
 0x1e9   : > { %v2041_v62 = vpop.f32.mrf.mxu2 }
 0x1ea   : > { %v2135_v41 = vadd.f32 %v2041_v62, %v1915_v4  ;;  %v2265_v61 = vpop.f32.mrf.mxu3  ;;  %v1824_v26 = vpop.f32.mrf.mxu1 }
 0x1eb   : > { %v1916_v16 = vadd.f32 %v1824_v26, %v4901_v59 }
 0x1ec   : > { %v2359_v25 = vadd.f32 %v2265_v61, %v2135_v41 }
 0x1ed   : > { %v2491_v40 = vpop.f32.mrf.mxu0  ;;  %3180 = vmatmul.msk.f32.gmra.mxu1 %vm299_vm1, %v4152_v8 }
 0x1ee   : > { %v2582_v58 = vadd.f32 %v2488_v6, %v2359_v25  ;;  %3214 = vmatmul.msk.f32.gmra.mxu2 %vm299_vm1, %v3372_v33 }
 0x1ef   : > { %3248 = vmatmul.msk.f32.gmra.mxu3 %vm299_vm1, %v4155_v29  ;;  %v3373_v29 = vld [vmem:[%s3576_s11 + $0x110] sm:$0xff] }
 0x1f0   : > { %3282 = vmatmul.msk.f32.gmra.mxu0 %vm299_vm1, %v4191_v1  ;;  %v2677_v63 = vadd.f32 %v2582_v58, %v2581_v15  ;;  %v2715_v46 = vmul.f32 %v2582_v58, %v2582_v58  ;;  %2787 = vxpose.xlu0.b32.cont [2/16] (narrow) %v2582_v58, 16  ;;  %v4902_v15 = vld [vmem:[#allocation42_spill] sm:$0xff] }
 0x1f1   : > { %v2044_v3 = vpop.f32.mrf.mxu2 }
 0x1f2   : > { %v2746_v36 = vadd.f32 %v2715_v46, %v2714_v9  ;;  %v2136_v6 = vadd.f32 %v2044_v3, %v1916_v16  ;;  %v2268_v8 = vpop.f32.mrf.mxu3  ;;  %v1827_v12 = vpop.f32.mrf.mxu1 }
 0x1f3   : > { %v1917_v41 = vadd.f32 %v1827_v12, %v4902_v15  ;;  %v4904_v15 = vld [vmem:[#allocation44_spill] sm:$0xff] }
 0x1f4   : > { %v2360_v18 = vadd.f32 %v2268_v8, %v2136_v6 }
 0x1f5   : > { %v2494_v4 = vpop.f32.mrf.mxu0  ;;  %3181 = vmatmul.msk.f32.gmra.mxu1 %vm299_vm1, %v4170_v50 }
 0x1f6   : > { %v2583_v62 = vadd.f32 %v2491_v40, %v2360_v18  ;;  %3215 = vmatmul.msk.f32.gmra.mxu2 %vm299_vm1, %v3373_v29 }
 0x1f7   : > { %3249 = vmatmul.msk.f32.gmra.mxu3 %vm299_vm1, %v4173_v37  ;;  %v3374_v37 = vld [vmem:[%s3576_s11 + $0x120] sm:$0xff] }
 0x1f8   : > { %3283 = vmatmul.msk.f32.gmra.mxu0 %vm299_vm1, %v4209_v53  ;;  %v2678_v61 = vadd.f32 %v2677_v63, %v2583_v62  ;;  %v2716_v26 = vmul.f32 %v2583_v62, %v2583_v62  ;;  %2788 = vxpose.xlu0.b32.cont [3/16] (narrow) %v2583_v62, 16  ;;  %v4903_v63 = vld [vmem:[#allocation43_spill] sm:$0xff] }
 0x1f9   : > { %v2047_v25 = vpop.f32.mrf.mxu2 }
 0x1fa   : > { %v2747_v40 = vadd.f32 %v2746_v36, %v2716_v26  ;;  %v2137_v58 = vadd.f32 %v2047_v25, %v1917_v41  ;;  %v2271_v33 = vpop.f32.mrf.mxu3  ;;  %v1830_v50 = vpop.f32.mrf.mxu1 }
 0x1fb   : > { %v1918_v46 = vadd.f32 %v1830_v50, %v4903_v63 }
 0x1fc   : > { %v2361_v9 = vadd.f32 %v2271_v33, %v2137_v58 }
 0x1fd   : > { %v2497_v59 = vpop.f32.mrf.mxu0  ;;  %3182 = vmatmul.msk.f32.gmra.mxu1 %vm299_vm1, %v4191_v1 }
 0x1fe   : > { %v2584_v16 = vadd.f32 %v2494_v4, %v2361_v9  ;;  %3216 = vmatmul.msk.f32.gmra.mxu2 %vm299_vm1, %v3374_v37 }
 0x1ff   : > { %3250 = vmatmul.msk.f32.gmra.mxu3 %vm299_vm1, %v4194_v38  ;;  %v3375_v38 = vld [vmem:[%s3576_s11 + $0x128] sm:$0xff] }
 0x200   : > { %3284 = vmatmul.msk.f32.gmra.mxu0 %vm299_vm1, %v4230_v10  ;;  %v2679_v3 = vadd.f32 %v2678_v61, %v2584_v16  ;;  %v2717_v36 = vmul.f32 %v2584_v16, %v2584_v16  ;;  %2789 = vxpose.xlu0.b32.cont [4/16] (narrow) %v2584_v16, 16  ;;  %v4905_v16 = vld [vmem:[#allocation45_spill] sm:$0xff] }
 0x201   : > { %v2050_v6 = vpop.f32.mrf.mxu2 }
 0x202   : > { %v2748_v8 = vadd.f32 %v2747_v40, %v2717_v36  ;;  %v2138_v12 = vadd.f32 %v2050_v6, %v1918_v46  ;;  %v2274_v18 = vpop.f32.mrf.mxu3  ;;  %v1833_v1 = vpop.f32.mrf.mxu1 }
 0x203   : > { %v1919_v41 = vadd.f32 %v1833_v1, %v4904_v15 }
 0x204   : > { %v2362_v4 = vadd.f32 %v2274_v18, %v2138_v12 }
 0x205   : > { %v2500_v62 = vpop.f32.mrf.mxu0  ;;  %3183 = vmatmul.msk.f32.gmra.mxu1 %vm299_vm1, %v4209_v53 }
 0x206   : > { %v2585_v29 = vadd.f32 %v2497_v59, %v2362_v4  ;;  %3217 = vmatmul.msk.f32.gmra.mxu2 %vm299_vm1, %v3375_v38  ;;  %v4906_v4 = vld [vmem:[#allocation46_spill] sm:$0xff] }
 0x207   : > { %3251 = vmatmul.msk.f32.gmra.mxu3 %vm299_vm1, %v4212_v2  ;;  %v3376_v2 = vld [vmem:[%s3576_s11 + $0x138] sm:$0xff] }
 0x208   : > { %3285 = vmatmul.msk.f32.gmra.mxu0 %vm299_vm1, %v4248_v13  ;;  %v2680_v61 = vadd.f32 %v2679_v3, %v2585_v29  ;;  %v2718_v26 = vmul.f32 %v2585_v29, %v2585_v29  ;;  %2790 = vxpose.xlu0.b32.cont [5/16] (narrow) %v2585_v29, 16 }
 0x209   : > { %v2053_v25 = vpop.f32.mrf.mxu2 }
 0x20a   : > { %v2749_v40 = vadd.f32 %v2748_v8, %v2718_v26  ;;  %v2139_v58 = vadd.f32 %v2053_v25, %v1919_v41  ;;  %v2277_v33 = vpop.f32.mrf.mxu3  ;;  %v1836_v53 = vpop.f32.mrf.mxu1 }
 0x20b   : > { %v1920_v37 = vadd.f32 %v1836_v53, %v4905_v16 }
 0x20c   : > { %v2363_v50 = vadd.f32 %v2277_v33, %v2139_v58  ;;  %v4907_v33 = vld [vmem:[#allocation47_spill] sm:$0xff] }
 0x20d   : > { %v2503_v9 = vpop.f32.mrf.mxu0  ;;  %3184 = vmatmul.msk.f32.gmra.mxu1 %vm299_vm1, %v4230_v10 }
 0x20e   : > { %v2586_v59 = vadd.f32 %v2500_v62, %v2363_v50  ;;  %3218 = vmatmul.msk.f32.gmra.mxu2 %vm299_vm1, %v3376_v2 }
 0x20f   : > { %3252 = vmatmul.msk.f32.gmra.mxu3 %vm299_vm1, %v4233_v11  ;;  %v3377_v11 = vld [vmem:[%s3576_s11 + $0x140] sm:$0xff] }
 0x210   : > { %3286 = vmatmul.msk.f32.gmra.mxu0 %vm299_vm1, %v4269_v28  ;;  %v2681_v63 = vadd.f32 %v2680_v61, %v2586_v59  ;;  %v2719_v46 = vmul.f32 %v2586_v59, %v2586_v59  ;;  %2791 = vxpose.xlu0.b32.cont [6/16] (narrow) %v2586_v59, 16 }
 0x211   : > { %v2056_v3 = vpop.f32.mrf.mxu2 }
 0x212   : > { %v2750_v36 = vadd.f32 %v2749_v40, %v2719_v46  ;;  %v2140_v6 = vadd.f32 %v2056_v3, %v1920_v37  ;;  %v2280_v8 = vpop.f32.mrf.mxu3  ;;  %v1839_v10 = vpop.f32.mrf.mxu1 }
 0x213   : > { %v1921_v62 = vadd.f32 %v1839_v10, %v4906_v4 }
 0x214   : > { %v2364_v12 = vadd.f32 %v2280_v8, %v2140_v6  ;;  %v4909_v6 = vld [vmem:[#allocation48_spill] sm:$0xff] }
 0x215   : > { %v2506_v18 = vpop.f32.mrf.mxu0  ;;  %3185 = vmatmul.msk.f32.gmra.mxu1 %vm299_vm1, %v4248_v13 }
 0x216   : > { %v2587_v1 = vadd.f32 %v2503_v9, %v2364_v12  ;;  %3219 = vmatmul.msk.f32.gmra.mxu2 %vm299_vm1, %v3377_v11 }
 0x217   : > { %3253 = vmatmul.msk.f32.gmra.mxu3 %vm299_vm1, %v4251_v5  ;;  %v3378_v5 = vld [vmem:[%s3576_s11 + $0x150] sm:$0xff] }
 0x218   : > { %3287 = vmatmul.msk.f32.gmra.mxu0 %vm299_vm1, %v4287_v21  ;;  %v2682_v29 = vadd.f32 %v2681_v63, %v2587_v1  ;;  %v2720_v38 = vmul.f32 %v2587_v1, %v2587_v1  ;;  %2792 = vxpose.xlu0.b32.cont [7/16] (narrow) %v2587_v1, 16 }
 0x219   : > { %v2059_v15 = vpop.f32.mrf.mxu2 }
 0x21a   : > { %v2751_v41 = vadd.f32 %v2750_v36, %v2720_v38  ;;  %v2141_v61 = vadd.f32 %v2059_v15, %v1921_v62  ;;  %v2283_v26 = vpop.f32.mrf.mxu3  ;;  %v1842_v13 = vpop.f32.mrf.mxu1  ;;  %v4908_v36 = vld [vmem:[#allocation51_spill] sm:$0xff]  ;;  %v4910_v15 = vld [vmem:[#allocation49_spill] sm:$0xff] }
 0x21b   : > { %v1922_v53 = vadd.f32 %v1842_v13, %v4907_v33 }
 0x21c   : > { %v2365_v25 = vadd.f32 %v2283_v26, %v2141_v61 }
 0x21d   : > { %v2509_v40 = vpop.f32.mrf.mxu0  ;;  %3186 = vmatmul.msk.f32.gmra.mxu1 %vm299_vm1, %v4269_v28 }
 0x21e   : > { %v2588_v58 = vadd.f32 %v2506_v18, %v2365_v25  ;;  %3220 = vmatmul.msk.f32.gmra.mxu2 %vm299_vm1, %v3378_v5 }
 0x21f   : > { %3254 = vmatmul.msk.f32.gmra.mxu3 %vm299_vm1, %v4272_v19  ;;  %v3379_v19 = vld [vmem:[%s3576_s11 + $0x158] sm:$0xff] }
 0x220   : > { %3288 = vmatmul.msk.f32.gmra.mxu0 %vm299_vm1, %v4308_v56  ;;  %v2683_v50 = vadd.f32 %v2682_v29, %v2588_v58  ;;  %v2721_v9 = vmul.f32 %v2588_v58, %v2588_v58  ;;  %2793 = vxpose.xlu0.b32.cont [8/16] (narrow) %v2588_v58, 16 }
 0x221   : > { %v2062_v59 = vpop.f32.mrf.mxu2 }
 0x222   : > { %v2752_v2 = vadd.f32 %v2751_v41, %v2721_v9  ;;  %v2142_v16 = vadd.f32 %v2062_v59, %v1922_v53  ;;  %v2286_v37 = vpop.f32.mrf.mxu3  ;;  %v1845_v28 = vpop.f32.mrf.mxu1  ;;  %v1756_v9 = vrot.slane %v4332_v45, 2  ;;  %v4911_v59 = vld [vmem:[#allocation50_spill] sm:$0xff] }
 0x223   : > { %v1923_v8 = vadd.f32 %v1845_v28, %v4909_v6 }
 0x224   : > { %v2366_v63 = vadd.f32 %v2286_v37, %v2142_v16 }
 0x225   : > { %v2512_v46 = vpop.f32.mrf.mxu0  ;;  %3187 = vmatmul.msk.f32.gmra.mxu1 %vm299_vm1, %v4287_v21 }
 0x226   : > { %v2589_v3 = vadd.f32 %v2509_v40, %v2366_v63  ;;  %3221 = vmatmul.msk.f32.gmra.mxu2 %vm299_vm1, %v3379_v19 }
 0x227   : > { %3255 = vmatmul.msk.f32.gmra.mxu3 %vm299_vm1, %v4290_v14  ;;  %v3380_v14 = vld [vmem:[%s3576_s11 + $0x168] sm:$0xff] }
 0x228   : > { %3289 = vmatmul.msk.f32.gmra.mxu0 %vm299_vm1, %v4908_v36  ;;  %v2684_v10 = vadd.f32 %v2683_v50, %v2589_v3  ;;  %v2722_v12 = vmul.f32 %v2589_v3, %v2589_v3  ;;  %2794 = vxpose.xlu0.b32.cont [9/16] (narrow) %v2589_v3, 16  ;;  %v1755_v50 = vrot.slane %v4345_v52, 2 }
 0x229   : > { %v2065_v18 = vpop.f32.mrf.mxu2 }
 0x22a   : > { %v2753_v1 = vadd.f32 %v2752_v2, %v2722_v12  ;;  %v2143_v11 = vadd.f32 %v2065_v18, %v1923_v8  ;;  %v2289_v4 = vpop.f32.mrf.mxu3  ;;  %v1848_v21 = vpop.f32.mrf.mxu1  ;;  %v1757_v8 = vsel %vm952_vm3, %v1755_v50, %v1756_v9 }
 0x22b   : > { %v1924_v41 = vadd.f32 %v1848_v21, %v4910_v15  ;;  %v264_v15 = vld [vmem:[%s3576_s11 + $0x1a0] sm:$0xff] }
 0x22c   : > { %v2367_v62 = vadd.f32 %v2289_v4, %v2143_v11  ;;  %v1758_v11 = vrot.slane %v4359_v47, 2 }
 0x22d   : > { %v2515_v29 = vpop.f32.mrf.mxu0  ;;  %3188 = vmatmul.msk.f32.gmra.mxu1 %vm299_vm1, %v4308_v56 }
 0x22e   : > { %v2590_v38 = vadd.f32 %v2512_v46, %v2367_v62  ;;  %3222 = vmatmul.msk.f32.gmra.mxu2 %vm299_vm1, %v3380_v14  ;;  %v263_v14 = vld [vmem:[%s3576_s11 + $0x198] sm:$0xff] }
 0x22f   : > { %3256 = vmatmul.msk.f32.gmra.mxu3 %vm299_vm1, %v4311_v30  ;;  %v3381_v30 = vld [vmem:[%s3576_s11 + $0x170] sm:$0xff]  ;;  %v2199_v47 = vrot.slane %v263_v14, 1 }
 0x230   : > { %3290 = vmatmul.msk.f32.gmra.mxu0 %vm299_vm1, %v4353_v48  ;;  %v2685_v61 = vadd.f32 %v2684_v10, %v2590_v38  ;;  %v2723_v26 = vmul.f32 %v2590_v38, %v2590_v38  ;;  %2795 = vxpose.xlu0.b32.cont [10/16] (narrow) %v2590_v38, 16  ;;  %v4912_v10 = vld [vmem:[#allocation52_spill] sm:$0xff] }
 0x231   : > { %v2068_v13 = vpop.f32.mrf.mxu2 }
 0x232   : > { %v2754_v25 = vadd.f32 %v2753_v1, %v2723_v26  ;;  %v2144_v40 = vadd.f32 %v2068_v13, %v1924_v41  ;;  %v2292_v58 = vpop.f32.mrf.mxu3  ;;  %v1851_v56 = vpop.f32.mrf.mxu1  ;;  %v2200_v26 = vrot.slane %v264_v15, 1  ;;  %v4913_v13 = vld [vmem:[#allocation53_spill] sm:$0xff] }
 0x233   : > { %v1925_v2 = vadd.f32 %v1851_v56, %v4911_v59  ;;  %v2423_v56 = vrot.slane %v264_v15, 2 }
 0x234   : > { %v2368_v5 = vadd.f32 %v2292_v58, %v2144_v40 }
 0x235   : > { %v2518_v33 = vpop.f32.mrf.mxu0  ;;  %3189 = vmatmul.msk.f32.gmra.mxu1 %vm299_vm1, %v4908_v36 }
 0x236   : > { %v2591_v53 = vadd.f32 %v2515_v29, %v2368_v5  ;;  %3223 = vmatmul.msk.f32.gmra.mxu2 %vm299_vm1, %v3381_v30 }
 0x237   : > { %3257 = vmatmul.msk.f32.gmra.mxu3 %vm299_vm1, %v4329_v22 }
 0x238   : > { %3291 = vmatmul.msk.f32.gmra.mxu0 %vm299_vm1, %v4374_v42  ;;  %v2686_v16 = vadd.f32 %v2685_v61, %v2591_v53  ;;  %v2724_v37 = vmul.f32 %v2591_v53, %v2591_v53  ;;  %2796 = vxpose.xlu0.b32.cont [11/16] (narrow) %v2591_v53, 16  ;;  %v2422_v61 = vrot.slane %v263_v14, 2 }
 0x239   : > { %v2071_v28 = vpop.f32.mrf.mxu2 }
 0x23a   : > { %v2755_v63 = vadd.f32 %v2754_v25, %v2724_v37  ;;  %v2145_v46 = vadd.f32 %v2071_v28, %v1925_v2  ;;  %v2295_v3 = vpop.f32.mrf.mxu3  ;;  %v1854_v19 = vpop.f32.mrf.mxu1  ;;  %v2424_v59 = vsel %vm952_vm3, %v2422_v61, %v2423_v56 }
 0x23b   : > { %v1926_v12 = vadd.f32 %v1854_v19, %v4912_v10 }
 0x23c   : > { %v2369_v36 = vadd.f32 %v2295_v3, %v2145_v46 }
 0x23d   : > { %v2521_v6 = vpop.f32.mrf.mxu0  ;;  %3190 = vmatmul.msk.f32.gmra.mxu1 %vm299_vm1, %v4353_v48 }
 0x23e   : > { %v2592_v22 = vadd.f32 %v2518_v33, %v2369_v36  ;;  %3224 = vmatmul.msk.f32.gmra.mxu2 %vm299_vm1, %v4345_v52 }
 0x23f   : > { %3258 = vmatmul.msk.f32.gmra.mxu3 %vm299_vm1, %v4356_v34  ;;  %v1759_v34 = vsel %vm952_vm3, %v1756_v9, %v1758_v11  ;;  %v265_v9 = vld [vmem:[%s3576_s11 + $0x1a8] sm:$0x3]  ;;  %s2891_s11 = sshll.u32 %s2887_s8, 4  ;;  %s2892_s11 = int_to_ptr.hbm [resolvable:$true] %s2891_s11 }
 0x240   : > { %3292 = vmatmul.msk.f32.gmra.mxu0 %vm299_vm1, %v1757_v8  ;;  %v2687_v18 = vadd.f32 %v2686_v16, %v2592_v22  ;;  %v2725_v1 = vmul.f32 %v2592_v22, %v2592_v22  ;;  %2797 = vxpose.xlu0.b32.cont [12/16] (narrow) %v2592_v22, 16  ;;  %v2202_v16 = vrot.slane %v265_v9, 1  ;;  %v2425_v46 = vrot.slane %v265_v9, 2  ;;  %s3396_s20 = sshra.s32 %s2892_s11, 4  ;;  %s3397_s20 = int_to_ptr.hbm [resolvable:$true] %s3396_s20 }
 0x241   : > { %v2074_v4 = vpop.f32.mrf.mxu2  ;;  %s3398_s24 = scalar_lea.hbm %s3397_s20, 2  ;;  %p3403_p0 = scmp.lt.s32.totalorder %s3397_s20, %s4792_s3 }
 0x242   : > { %v2756_v21 = vadd.f32 %v2755_v63, %v2725_v1  ;;  %v2146_v48 = vadd.f32 %v2074_v4, %v1926_v12  ;;  %v2298_v62 = vpop.f32.mrf.mxu3  ;;  %v1857_v29 = vpop.f32.mrf.mxu1  ;;  %p3399_p11 = scmp.ne.s32.totalorder %s3397_s20, %s3398_s24  ;;  %p3404_p1 = scmp.lt.s32.totalorder %s3402_s27, %s3398_s24 }
 0x243   : > { %v1927_v25 = vadd.f32 %v1857_v29, %v4913_v13 }
 0x244   : > { %v2370_v38 = vadd.f32 %v2298_v62, %v2146_v48  ;;  %p3400_p12 = pnand %p3399_p11, %p3538_p5  ;;  %p3405_p2 = por %p3404_p1, %p3403_p0 }
 0x245   : > { %v2524_v52 = vpop.f32.mrf.mxu0  ;;  %3191 = vmatmul.msk.f32.gmra.mxu1 %vm299_vm1, %v4374_v42 }
 0x246   : > { %v2593_v41 = vadd.f32 %v2521_v6, %v2370_v38  ;;  %3225 = vmatmul.msk.f32.gmra.mxu2 %vm299_vm1, %v4332_v45  ;;  %p3401_p13 = pneg %p3400_p12 }
 0x247   : > { %3259 = vmatmul.msk.f32.gmra.mxu3 %vm299_vm1, %v4377_v0  ;;  %v2201_v0 = vsel %vm593_vm2, %v2199_v47, %v2200_v26 }
 0x248   : > { %3293 = vmatmul.msk.f32.gmra.mxu0 %vm299_vm1, %v1759_v34  ;;  %v2688_v40 = vadd.f32 %v2687_v18, %v2593_v41  ;;  %v2726_v58 = vmul.f32 %v2593_v41, %v2593_v41  ;;  %2798 = vxpose.xlu0.b32.cont [13/16] (narrow) %v2593_v41, 16  ;;  %v2426_v18 = vsel %vm952_vm3, %v2423_v56, %v2425_v46  ;;  %p3406_p3 = pnand %p3405_p2, %p3401_p13 }
 0x249   : > { %v2077_v5 = vpop.f32.mrf.mxu2 }
 0x24a   : > { %v2757_v42 = vadd.f32 %v2756_v21, %v2726_v58  ;;  %v2147_v33 = vadd.f32 %v2077_v5, %v1927_v25  ;;  %v2301_v53 = vpop.f32.mrf.mxu3  ;;  %v1860_v45 = vpop.f32.mrf.mxu1 }
 0x24b   : > { %v1928_v37 = vadd.f32 %v1860_v45, %v4379_v31 }
 0x24c   : > { %v2371_v30 = vadd.f32 %v2301_v53, %v2147_v33 }
 0x24d   : > { %v2527_v50 = vpop.f32.mrf.mxu0  ;;  %3192 = vmatmul.msk.f32.gmra.mxu1 %vm299_vm1, %v1757_v8  ;;  %v2203_v8 = vsel %vm593_vm2, %v2200_v26, %v2202_v16 }
 0x24e   : > { %v2594_v2 = vadd.f32 %v2524_v52, %v2371_v30  ;;  %3226 = vmatmul.msk.f32.gmra.mxu2 %vm299_vm1, %v263_v14 }
 0x24f   : > { %3260 = vmatmul.msk.f32.gmra.mxu3 %vm299_vm1, %v2201_v0 }
 0x250   : > { %3294 = vmatmul.msk.f32.gmra.mxu0 %vm299_vm1, %v2424_v59  ;;  %v2689_v28 = vadd.f32 %v2688_v40, %v2594_v2  ;;  %v2727_v63 = vmul.f32 %v2594_v2, %v2594_v2  ;;  %2799 = vxpose.xlu0.b32.cont [14/16] (narrow) %v2594_v2, 16 }
 0x251   : > { %v2080_v3 = vpop.f32.mrf.mxu2 }
 0x252   : > { %v2758_v19 = vadd.f32 %v2757_v42, %v2727_v63  ;;  %v2148_v36 = vadd.f32 %v2080_v3, %v1928_v37  ;;  %v2304_v6 = vpop.f32.mrf.mxu3  ;;  %v1863_v22 = vpop.f32.mrf.mxu1 }
 0x253   : > { %v1929_v31 = vadd.f32 %v1863_v22, %v4390_v27 }
 0x254   : > { %v2372_v10 = vadd.f32 %v2304_v6, %v2148_v36 }
 0x255   : > { %v2530_v12 = vpop.f32.mrf.mxu0  ;;  %3193 = vmatmul.msk.f32.gmra.mxu1 %vm299_vm1, %v1759_v34 }
 0x256   : > { %v2595_v1 = vadd.f32 %v2527_v50, %v2372_v10  ;;  %3227 = vmatmul.msk.f32.gmra.mxu2 %vm299_vm1, %v264_v15 }
 0x257   : > { %3261 = vmatmul.msk.f32.gmra.mxu3 %vm299_vm1, %v2203_v8 }
 0x258   : > { %3295 = vmatmul.msk.f32.gmra.mxu0 %vm299_vm1, %v2426_v18  ;;  %v2690_v11 = vadd.f32 %v2689_v28, %v2595_v1  ;;  %v2728_v4 = vmul.f32 %v2595_v1, %v2595_v1  ;;  %2800 = vxpose.xlu0.b32.cont [15/16] (narrow) %v2595_v1, 16 }
 0x259   : > { %v2083_v21 = vpop.f32.mrf.mxu2 }
 0x25a   : > { %v2759_v48 = vadd.f32 %v2758_v19, %v2728_v4  ;;  %v2149_v62 = vadd.f32 %v2083_v21, %v1929_v31  ;;  %v2307_v29 = vpop.f32.mrf.mxu3  ;;  %v1866_v38 = vpop.f32.mrf.mxu1 }
 0x25b   : > { %v1930_v34 = vadd.f32 %v1866_v38, %v4401_v43 }
 0x25c   : > { %v2373_v52 = vadd.f32 %v2307_v29, %v2149_v62 }
 0x25d   : > { %v2533_v14 = vpop.f32.mrf.mxu0 }
 0x25e   : > { %v2596_v41 = vadd.f32 %v2530_v12, %v2373_v52 }
 0x260   : > { %v2691_v15 = vadd.f32 %v2690_v11, %v2596_v41  ;;  %v2729_v47 = vmul.f32 %v2596_v41, %v2596_v41  ;;  %2801 = vxpose.xlu0.b32.end [16/16] (narrow) %v2596_v41, 16 }
 0x261   : > { %v2086_v61 = vpop.f32.mrf.mxu2 }
 0x262   : > { %v2760_v26 = vadd.f32 %v2759_v48, %v2729_v47  ;;  %v2150_v13 = vadd.f32 %v2086_v61, %v1930_v34  ;;  %v2310_v27 = vpop.f32.mrf.mxu3  ;;  %v1869_v25 = vpop.f32.mrf.mxu1 }
 0x263   : > { %v1931_v5 = vadd.f32 %v1869_v25, %v4412_v55 }
 0x264   : > { %v2374_v40 = vadd.f32 %v2310_v27, %v2150_v13 }
 0x265   : > { %v2536_v58 = vpop.f32.mrf.mxu0 }
 0x266   : > { %v2597_v56 = vadd.f32 %v2533_v14, %v2374_v40 }
 0x268   : > { %v2692_v42 = vadd.f32 %v2691_v15, %v2597_v56  ;;  %v2730_v33 = vmul.f32 %v2597_v56, %v2597_v56  ;;  %2818 = vxpose.xlu1.b32.start [1/16] (narrow) %v2597_v56, 16 }
 0x269   : > { %v2089_v53 = vpop.f32.mrf.mxu2 }
 0x26a   : > { %v2761_v45 = vadd.f32 %v2760_v26, %v2730_v33  ;;  %v2151_v30 = vadd.f32 %v2089_v53, %v1931_v5  ;;  %v2313_v43 = vpop.f32.mrf.mxu3  ;;  %v1872_v0 = vpop.f32.mrf.mxu1 }
 0x26b   : > { %v1932_v2 = vadd.f32 %v1872_v0, %v4423_v35 }
 0x26c   : > { %v2375_v50 = vadd.f32 %v2313_v43, %v2151_v30 }
 0x26d   : > { %v2539_v9 = vpop.f32.mrf.mxu0 }
 0x26e   : > { %v2598_v59 = vadd.f32 %v2536_v58, %v2375_v50 }
 0x270   : > { %v2693_v16 = vadd.f32 %v2692_v42, %v2598_v59  ;;  %v2731_v37 = vmul.f32 %v2598_v59, %v2598_v59  ;;  %2819 = vxpose.xlu1.b32.cont [2/16] (narrow) %v2598_v59, 16 }
 0x271   : > { %v2092_v28 = vpop.f32.mrf.mxu2 }
 0x272   : > { %v2762_v63 = vadd.f32 %v2761_v45, %v2731_v37  ;;  %v2152_v46 = vadd.f32 %v2092_v28, %v1932_v2  ;;  %v2316_v55 = vpop.f32.mrf.mxu3  ;;  %v1875_v3 = vpop.f32.mrf.mxu1 }
 0x273   : > { %v1933_v22 = vadd.f32 %v1875_v3, %v4434_v51 }
 0x274   : > { %v2376_v19 = vadd.f32 %v2316_v55, %v2152_v46 }
 0x275   : > { %v2542_v36 = vpop.f32.mrf.mxu0 }
 0x276   : > { %v2599_v6 = vadd.f32 %v2539_v9, %v2376_v19 }
 0x278   : > { %v2694_v10 = vadd.f32 %v2693_v16, %v2599_v6  ;;  %v2732_v8 = vmul.f32 %v2599_v6, %v2599_v6  ;;  %2820 = vxpose.xlu1.b32.cont [3/16] (narrow) %v2599_v6, 16 }
 0x279   : > { %v2095_v12 = vpop.f32.mrf.mxu2 }
 0x27a   : > { %v2763_v18 = vadd.f32 %v2762_v63, %v2732_v8  ;;  %v2153_v1 = vadd.f32 %v2095_v12, %v1933_v22  ;;  %v2319_v35 = vpop.f32.mrf.mxu3  ;;  %v1878_v31 = vpop.f32.mrf.mxu1 }
 0x27b   : > { %v1934_v48 = vadd.f32 %v1878_v31, %v4445_v23 }
 0x27c   : > { %v2377_v11 = vadd.f32 %v2319_v35, %v2153_v1 }
 0x27d   : > { %v2545_v4 = vpop.f32.mrf.mxu0 }
 0x27e   : > { %v2600_v21 = vadd.f32 %v2542_v36, %v2377_v11 }
 0x280   : > { %v2695_v62 = vadd.f32 %v2694_v10, %v2600_v21  ;;  %v2733_v29 = vmul.f32 %v2600_v21, %v2600_v21  ;;  %2821 = vxpose.xlu1.b32.cont [4/16] (narrow) %v2600_v21, 16 }
 0x281   : > { %v2098_v38 = vpop.f32.mrf.mxu2 }
 0x282   : > { %v2764_v52 = vadd.f32 %v2763_v18, %v2733_v29  ;;  %v2154_v14 = vadd.f32 %v2098_v38, %v1934_v48  ;;  %v2322_v51 = vpop.f32.mrf.mxu3  ;;  %v1881_v41 = vpop.f32.mrf.mxu1 }
 0x283   : > { %v1935_v61 = vadd.f32 %v1881_v41, %v4456_v32 }
 0x284   : > { %v2378_v34 = vadd.f32 %v2322_v51, %v2154_v14 }
 0x285   : > { %v2548_v15 = vpop.f32.mrf.mxu0 }
 0x286   : > { %v2601_v47 = vadd.f32 %v2545_v4, %v2378_v34 }
 0x288   : > { %v2696_v26 = vadd.f32 %v2695_v62, %v2601_v47  ;;  %v2734_v13 = vmul.f32 %v2601_v47, %v2601_v47  ;;  %2822 = vxpose.xlu1.b32.cont [5/16] (narrow) %v2601_v47, 16 }
 0x289   : > { %v2101_v27 = vpop.f32.mrf.mxu2 }
 0x28a   : > { %v2765_v25 = vadd.f32 %v2764_v52, %v2734_v13  ;;  %v2155_v40 = vadd.f32 %v2101_v27, %v1935_v61  ;;  %v2325_v23 = vpop.f32.mrf.mxu3  ;;  %v1884_v58 = vpop.f32.mrf.mxu1 }
 0x28b   : > { %v1936_v33 = vadd.f32 %v1884_v58, %v4467_v7 }
 0x28c   : > { %v2379_v56 = vadd.f32 %v2325_v23, %v2155_v40 }
 0x28d   : > { %v2551_v5 = vpop.f32.mrf.mxu0 }
 0x28e   : > { %v2602_v42 = vadd.f32 %v2548_v15, %v2379_v56 }
 0x290   : > { %v2697_v53 = vadd.f32 %v2696_v26, %v2602_v42  ;;  %v2735_v45 = vmul.f32 %v2602_v42, %v2602_v42  ;;  %2823 = vxpose.xlu1.b32.cont [6/16] (narrow) %v2602_v42, 16 }
 0x291   : > { %v2104_v30 = vpop.f32.mrf.mxu2 }
 0x292   : > { %v2766_v43 = vadd.f32 %v2765_v25, %v2735_v45  ;;  %v2156_v0 = vadd.f32 %v2104_v30, %v1936_v33  ;;  %v2328_v32 = vpop.f32.mrf.mxu3  ;;  %v1887_v50 = vpop.f32.mrf.mxu1 }
 0x293   : > { %v1937_v16 = vadd.f32 %v1887_v50, %v4478_v39 }
 0x294   : > { %v2380_v9 = vadd.f32 %v2328_v32, %v2156_v0 }
 0x295   : > { %v2554_v59 = vpop.f32.mrf.mxu0 }
 0x296   : > { %v2603_v2 = vadd.f32 %v2551_v5, %v2380_v9 }
 0x298   : > { %v2698_v37 = vadd.f32 %v2697_v53, %v2603_v2  ;;  %v2736_v28 = vmul.f32 %v2603_v2, %v2603_v2  ;;  %2824 = vxpose.xlu1.b32.cont [7/16] (narrow) %v2603_v2, 16 }
 0x299   : > { %v2107_v63 = vpop.f32.mrf.mxu2 }
 0x29a   : > { %v2767_v46 = vadd.f32 %v2766_v43, %v2736_v28  ;;  %v2157_v55 = vadd.f32 %v2107_v63, %v1937_v16  ;;  %v2331_v7 = vpop.f32.mrf.mxu3  ;;  %v1890_v3 = vpop.f32.mrf.mxu1 }
 0x29b   : > { %v1938_v22 = vadd.f32 %v1890_v3, %v4489_v54 }
 0x29c   : > { %v2381_v19 = vadd.f32 %v2331_v7, %v2157_v55 }
 0x29d   : > { %v2557_v36 = vpop.f32.mrf.mxu0 }
 0x29e   : > { %v2604_v6 = vadd.f32 %v2554_v59, %v2381_v19 }
 0x2a0   : > { %v2699_v10 = vadd.f32 %v2698_v37, %v2604_v6  ;;  %v2737_v8 = vmul.f32 %v2604_v6, %v2604_v6  ;;  %2825 = vxpose.xlu1.b32.cont [8/16] (narrow) %v2604_v6, 16 }
 0x2a1   : > { %v2110_v12 = vpop.f32.mrf.mxu2 }
 0x2a2   : > { %v2768_v18 = vadd.f32 %v2767_v46, %v2737_v8  ;;  %v2158_v1 = vadd.f32 %v2110_v12, %v1938_v22  ;;  %v2334_v39 = vpop.f32.mrf.mxu3  ;;  %v1893_v35 = vpop.f32.mrf.mxu1 }
 0x2a3   : > { %v1939_v21 = vadd.f32 %v1893_v35, %v4500_v20 }
 0x2a4   : > { %v2382_v31 = vadd.f32 %v2334_v39, %v2158_v1 }
 0x2a5   : > { %v2560_v11 = vpop.f32.mrf.mxu0 }
 0x2a6   : > { %v2605_v4 = vadd.f32 %v2557_v36, %v2382_v31 }
 0x2a8   : > { %v2700_v48 = vadd.f32 %v2699_v10, %v2605_v4  ;;  %v2738_v62 = vmul.f32 %v2605_v4, %v2605_v4  ;;  %2826 = vxpose.xlu1.b32.cont [9/16] (narrow) %v2605_v4, 16 }
 0x2a9   : > { %v2113_v29 = vpop.f32.mrf.mxu2 }
 0x2aa   : > { %v2769_v38 = vadd.f32 %v2768_v18, %v2738_v62  ;;  %v2159_v52 = vadd.f32 %v2113_v29, %v1939_v21  ;;  %v2337_v54 = vpop.f32.mrf.mxu3  ;;  %v1896_v14 = vpop.f32.mrf.mxu1 }
 0x2ab   : > { %v1940_v15 = vadd.f32 %v1896_v14, %v4511_v57 }
 0x2ac   : > { %v2383_v51 = vadd.f32 %v2337_v54, %v2159_v52 }
 0x2ad   : > { %v2563_v41 = vpop.f32.mrf.mxu0 }
 0x2ae   : > { %v2606_v34 = vadd.f32 %v2560_v11, %v2383_v51 }
 0x2b0   : > { %v2701_v47 = vadd.f32 %v2700_v48, %v2606_v34  ;;  %v2739_v61 = vmul.f32 %v2606_v34, %v2606_v34  ;;  %2827 = vxpose.xlu1.b32.cont [10/16] (narrow) %v2606_v34, 16 }
 0x2b1   : > { %v2116_v26 = vpop.f32.mrf.mxu2 }
 0x2b2   : > { %v2770_v13 = vadd.f32 %v2769_v38, %v2739_v61  ;;  %v2160_v27 = vadd.f32 %v2116_v26, %v1940_v15  ;;  %v2340_v20 = vpop.f32.mrf.mxu3  ;;  %v1899_v25 = vpop.f32.mrf.mxu1 }
 0x2b3   : > { %v1941_v56 = vadd.f32 %v1899_v25, %v4522_v60 }
 0x2b4   : > { %v2384_v40 = vadd.f32 %v2340_v20, %v2160_v27 }
 0x2b5   : > { %v2566_v23 = vpop.f32.mrf.mxu0 }
 0x2b6   : > { %v2607_v58 = vadd.f32 %v2563_v41, %v2384_v40 }
 0x2b8   : > { %v2702_v5 = vadd.f32 %v2701_v47, %v2607_v58  ;;  %v2740_v42 = vmul.f32 %v2607_v58, %v2607_v58  ;;  %2828 = vxpose.xlu1.b32.cont [11/16] (narrow) %v2607_v58, 16 }
 0x2b9   : > { %v2119_v33 = vpop.f32.mrf.mxu2 }
 0x2ba   : > { %v2771_v53 = vadd.f32 %v2770_v13, %v2740_v42  ;;  %v2161_v45 = vadd.f32 %v2119_v33, %v1941_v56  ;;  %v2343_v57 = vpop.f32.mrf.mxu3  ;;  %v1902_v30 = vpop.f32.mrf.mxu1 }
 0x2bb   : > { %v1942_v50 = vadd.f32 %v1902_v30, %v4533_v24 }
 0x2bc   : > { %v2385_v43 = vadd.f32 %v2343_v57, %v2161_v45 }
 0x2bd   : > { %v2569_v0 = vpop.f32.mrf.mxu0 }
 0x2be   : > { %v2608_v32 = vadd.f32 %v2566_v23, %v2385_v43 }
 0x2c0   : > { %v2703_v9 = vadd.f32 %v2702_v5, %v2608_v32  ;;  %v2741_v59 = vmul.f32 %v2608_v32, %v2608_v32  ;;  %2829 = vxpose.xlu1.b32.cont [12/16] (narrow) %v2608_v32, 16  ;;  %v2802_v5 = vpop.trf.xlu0 }
 0x2c1   : > { %v2122_v2 = vpop.f32.mrf.mxu2  ;;  %2850 = vst [vmem:[%s4739_s17] sm:$0xff] %v2802_v5 }
 0x2c2   : > { %v2772_v16 = vadd.f32 %v2771_v53, %v2741_v59  ;;  %v2162_v37 = vadd.f32 %v2122_v2, %v1942_v50  ;;  %v2346_v60 = vpop.f32.mrf.mxu3  ;;  %v1905_v28 = vpop.f32.mrf.mxu1 }
 0x2c3   : > { %v1943_v7 = vadd.f32 %v1905_v28, %v4544_v44 }
 0x2c4   : > { %v2386_v63 = vadd.f32 %v2346_v60, %v2162_v37 }
 0x2c5   : > { %v2572_v55 = vpop.f32.mrf.mxu0 }
 0x2c6   : > { %v2609_v46 = vadd.f32 %v2569_v0, %v2386_v63 }
 0x2c8   : > { %v2704_v3 = vadd.f32 %v2703_v9, %v2609_v46  ;;  %v2742_v19 = vmul.f32 %v2609_v46, %v2609_v46  ;;  %2830 = vxpose.xlu1.b32.cont [13/16] (narrow) %v2609_v46, 16 }
 0x2c9   : > { %v2125_v36 = vpop.f32.mrf.mxu2 }
 0x2ca   : > { %v2773_v6 = vadd.f32 %v2772_v16, %v2742_v19  ;;  %v2163_v22 = vadd.f32 %v2125_v36, %v1943_v7  ;;  %v2349_v24 = vpop.f32.mrf.mxu3  ;;  %v1908_v10 = vpop.f32.mrf.mxu1 }
 0x2cb   : > { %v1944_v18 = vadd.f32 %v1908_v10, %v4555_v49 }
 0x2cc   : > { %v2387_v8 = vadd.f32 %v2349_v24, %v2163_v22 }
 0x2cd   : > { %v2575_v31 = vpop.f32.mrf.mxu0 }
 0x2ce   : > { %v2610_v12 = vadd.f32 %v2572_v55, %v2387_v8 }
 0x2d0   : > { %v2705_v1 = vadd.f32 %v2704_v3, %v2610_v12  ;;  %v2743_v39 = vmul.f32 %v2610_v12, %v2610_v12  ;;  %2831 = vxpose.xlu1.b32.cont [14/16] (narrow) %v2610_v12, 16 }
 0x2d1   : > { %v2128_v35 = vpop.f32.mrf.mxu2 }
 0x2d2   : > { %v2774_v11 = vadd.f32 %v2773_v6, %v2743_v39  ;;  %v2164_v4 = vadd.f32 %v2128_v35, %v1944_v18  ;;  %v2352_v44 = vpop.f32.mrf.mxu3  ;;  %v1911_v48 = vpop.f32.mrf.mxu1 }
 0x2d3   : > { %v1945_v29 = vadd.f32 %v1911_v48, %v4566_v17 }
 0x2d4   : > { %v2388_v21 = vadd.f32 %v2352_v44, %v2164_v4 }
 0x2d5   : > { %v2578_v41 = vpop.f32.mrf.mxu0 }
 0x2d6   : > { %v2611_v62 = vadd.f32 %v2575_v31, %v2388_v21 }
 0x2d8   : > { %v2706_v38 = vadd.f32 %v2705_v1, %v2611_v62  ;;  %v2744_v52 = vmul.f32 %v2611_v62, %v2611_v62  ;;  %2832 = vxpose.xlu1.b32.cont [15/16] (narrow) %v2611_v62, 16 }
 0x2d9   : > { %v2131_v54 = vpop.f32.mrf.mxu2 }
 0x2da   : > { %v2775_v14 = vadd.f32 %v2774_v11, %v2744_v52  ;;  %v2165_v49 = vadd.f32 %v2131_v54, %v1945_v29  ;;  %v2355_v51 = vpop.f32.mrf.mxu3 }
 0x2dc   : > { %v2389_v34 = vadd.f32 %v2355_v51, %v2165_v49 }
 0x2de   : > { %v2612_v15 = vadd.f32 %v2578_v41, %v2389_v34 }
 0x2e0   : > { %v2707_v47 = vadd.f32 %v2706_v38, %v2612_v15  ;;  %v2745_v61 = vmul.f32 %v2612_v15, %v2612_v15  ;;  %2833 = vxpose.xlu1.b32.end [16/16] (narrow) %v2612_v15, 16 }
 0x2e2   : > { %v2708_v26 = vrot.slane %v2707_v47, 4  ;;  %v2776_v13 = vadd.f32 %v2775_v14, %v2745_v61 }
 0x2e4   : > { %v2709_v27 = vadd.f32 %v2708_v26, %v2707_v47  ;;  %v2777_v20 = vrot.slane %v2776_v13, 4 }
 0x2e6   : > { %v2710_v17 = vrot.slane %v2709_v27, 2  ;;  %v2778_v25 = vadd.f32 %v2777_v20, %v2776_v13 }
 0x2e8   : > { %v2711_v40 = vadd.f32 %v2710_v17, %v2709_v27  ;;  %v2779_v23 = vrot.slane %v2778_v25, 2 }
 0x2ea   : > { %v2712_v58 = vrot.slane %v2711_v40, 1  ;;  %v2780_v56 = vadd.f32 %v2779_v23, %v2778_v25 }
 0x2ec   : > { %v2781_v42 = vrot.slane %v2780_v56, 1  ;;  %v2713_v33 = vadd.f32 %v2712_v58, %v2711_v40 }
 0x2ee   : > { %v2782_v53 = vadd.f32 %v2781_v42, %v2780_v56 }
 0x2f0   : > { %v2784_v45 = vsel %vm2783_vm4, %v2713_v33, %v2782_v53 }
 0x2f1   : > { %2785 = vst [vmem:[%s174_s9] sm:$0x3] %v2784_v45 }
 0x2f2   : > { %3409 = shalt.err (!%p3406_p3)
}
 0x2f3   : > { %3309 = dma.vmem_to_hbm [thread:$0]  (%p3538_p5), %s2890_s10, 32, %s2892_s11, %s2860_s19   ;;  %v2803_v57 = vpop.trf.xlu0 }
 0x2f4   : > { %2852 = vst [vmem:[%s4739_s17 + $0x10] sm:$0xff] %v2803_v57  ;;  %s3303_s4 = sshll.u32 %s3521_s16, 5  ;;  %s2872_s8 = sshll.u32 %s4739_s17, 4  ;;  %s2873_s8 = int_to_ptr.vmem [resolvable:$true] %s2872_s8 }
 0x2f5   : > { %s2871_s7 = scalar_lea.hbm %s4791_s2, %s3303_s4  ;;  %s2855_s20 = scalar_lea.sflag [#allocation4], %s4731_s29 }
 0x2f6   : > { %s2874_s9 = sshll.u32 %s2871_s7, 4  ;;  %s3430_s19 = scalar_lea.hbm %s4791_s2, 64  ;;  %s2875_s9 = int_to_ptr.hbm [resolvable:$true] %s2874_s9 }
 0x2f7   : > { %s3424_s24 = sshra.s32 %s2875_s9, 4  ;;  %s3425_s24 = int_to_ptr.hbm [resolvable:$true] %s3424_s24 }
 0x2f8   : > { %s3426_s10 = scalar_lea.hbm %s3425_s24, 32  ;;  %p3431_p9 = scmp.lt.s32.totalorder %s3425_s24, %s4791_s2 }
 0x2f9   : > { %p3427_p4 = scmp.ne.s32.totalorder %s3425_s24, %s3426_s10  ;;  %p3432_p10 = scmp.lt.s32.totalorder %s3430_s19, %s3426_s10 }
 0x2fb   : > { %p3428_p7 = pnand %p3427_p4, %p3538_p5  ;;  %p3433_p11 = por %p3432_p10, %p3431_p9 }
 0x2fd   : > { %p3429_p8 = pneg %p3428_p7 }
 0x2ff   : > { %p3434_p12 = pnand %p3433_p11, %p3429_p8 }
 0x30c   : > { %v2834_v30 = vpop.trf.xlu1 }
 0x30d   : > { %2851 = vst [vmem:[%s4739_s17 + $0x8] sm:$0xff] %v2834_v30 }
 0x314   : > { %v2835_v43 = vpop.trf.xlu1 }
 0x315   : > { %2853 = vst [vmem:[%s4739_s17 + $0x18] sm:$0xff] %v2835_v43 }
 0x316   : > { %3437 = shalt.err (!%p3434_p12)
}
 0x317   : > { %s3478_s29 = smov 256   ;;  %s3479_s17 = smov 16  }
 0x318   : > { %3308 = dma.vmem_to_hbm [thread:$0]  (%p3538_p5), %s2873_s8, 512, %s2875_s9, %s2855_s20, %s3478_s29, %s3478_s29, %s3479_s17  }
 0x319 PF: > { %p3319_p13 = scmp.ge.s32.totalorder %s3476_s15, 2  ;;  %s2903_s27 = sand.u32 1, %s3464_s12  }
 0x31a   : > { %s2904_s28 = scalar_lea.sflag [#allocation4], %s2903_s27 }
 0x31b   : > { %p3313_p0 = pnand %p3319_p13, %p3542_p6 }
 0x31d   : > { %p3314_p1 = pneg %p3313_p0 }
 0x31f   : > { %3455 = dma.done.wait (%p3314_p1), %s2904_s28, 512  }
 0x320   : > { %3457 = vsyncadd (%p3314_p1), %s2904_s28, 4294966784  ;;  %s2914_s30 = scalar_lea.sflag [#allocation6], %s2903_s27 }
 0x321   : > { %3459 = dma.done.wait (%p3314_p1), %s2914_s30, 32  }
 0x322   : > { %3461 = vsyncadd (%p3314_p1), %s2914_s30, 4294967264  ;;  %p17_p5 = scmp.ge.s32.totalorder %s3525_s18, 4   ;;  %s4914_s12 = smov %s3468_s13 }
 0x323   : > { %s4915_s13 = smov %s3472_s14  ;;  %s4916_s14 = smov %s3536_s21 }
 0x324   : > { %s4917_s15 = smov %s3525_s18  ;;  %19 = sbr.rel (!%p17_p5) target bundleno = 5 (0x5), region = 88 }
 0x329   :  { %2920 = vsyncpa [#allocation4], 1 }
 0x32a   :  { %2922 = vsyncpa [#allocation4 + $0x1], 1 }
 0x32b   :  { %2923 = vsyncpa [#allocation6], 1 }
 0x32c   :  { %2925 = vsyncpa [#allocation6 + $0x1], 1 }

</bundles_post_ra>
